<compile_context>
chip_gen: v6e
topology: v6e:2x2x1
jax: 0.10.0
libtpu: 0.0.40
codegen_flags: <defaults>
</compile_context>

<pallas_src>
import functools

import jax
import jax.numpy as jnp
from jax import lax
from jax.experimental import pallas as pl
from jax.experimental.pallas import tpu as pltpu


def _round_up(x, m):
    return (x + m - 1) // m * m


def _pick_tile_h(h, w, target_rows=512):
    """Largest divisor of h whose row-tile (tile_h * w) stays near target_rows."""
    t = max(1, min(h, max(1, target_rows // max(w, 1))))
    while h % t:
        t -= 1
    return t


def _conv_relu_pool_kernel(x_ref, w_ref, b_ref, feat_ref, pool_ref, *,
                           tile_h, w, cin, cout_p, inv_hw):
    """One (batch, row-tile) grid step.

    x_ref:    (1, 1, tile_h+2, w+2, cin)  bf16 halo'd NHWC row tile (padded spatially)
    w_ref:    (9, cin, cout_p)            bf16 conv weight, (kh*3+kw) major, Cout zero-padded
    b_ref:    (1, cout_p)                 f32 bias (zero-padded)
    feat_ref: (1, tile_h*w, cout_p)       f32 conv+bias+relu output rows for this tile
    pool_ref: (1, 1, cout_p)              f32 per-batch global-average accumulator
    """
    t = pl.program_id(1)
    tile_m = tile_h * w

    xt = x_ref[0, 0]                                   # (tile_h+2, w+2, cin), bf16

    # 3x3 conv as 9 accumulated MXU dots over shifted views of the VMEM tile
    # (no im2col tensor ever touches HBM).  K = Cin is intrinsically tiny for a
    # conv stem (3-4); kernel is HBM-bound here so MXU K-fill is not the limiter.
    acc = jnp.zeros((tile_m, cout_p), jnp.float32)
    for kh in range(3):
        for kw in range(3):
            patch = xt[kh:kh + tile_h, kw:kw + w, :].reshape(tile_m, cin)
            acc += jnp.dot(patch, w_ref[kh * 3 + kw],
                           preferred_element_type=jnp.float32)

    acc = jnp.maximum(acc + b_ref[...], 0.0)           # bias + ReLU, f32 epilogue
    feat_ref[...] = acc[None].astype(feat_ref.dtype)   # lane-dense (cout_p multiple of 128)

    # AdaptiveAvgPool2d((1,1)): init / accumulate / finalize over the row-tile axis.
    @pl.when(t == 0)
    def _():
        pool_ref[...] = jnp.zeros_like(pool_ref)

    pool_ref[...] += acc.sum(axis=0)[None, None, :]

    @pl.when(t == pl.num_programs(1) - 1)
    def _():
        pool_ref[...] = pool_ref[...] * inv_hw


def cnn2d_forward(x_nchw, conv_w, conv_b, *, tile_h=None,
                  compute_dtype=jnp.bfloat16):
    """CNN2D.forward: retDict = featMod(x); retDict['feat_pooled'] = avgpool(feat).squeeze().

    Returns {'feat': (N, H, W, Cout) NHWC, 'feat_pooled': (N, Cout)}.
    ('feat' is NHWC; values are identical to PyTorch's NCHW up to a layout transpose.)
    """
    n, cin, h, w = x_nchw.shape
    cout = conv_w.shape[0]
    if tile_h is None:
        tile_h = _pick_tile_h(h, w)
    assert h % tile_h == 0, "tile_h must divide H"
    n_t = h // tile_h
    tile_m = tile_h * w
    hw = h * w
    cout_p = _round_up(cout, 128)          # lane-dense stores / native MXU output width

    # ---- layout plumbing (plain JAX, cheap relative to the feat output) ----
    x_nhwc = jnp.transpose(x_nchw, (0, 2, 3, 1)).astype(compute_dtype)
    xp = jnp.pad(x_nhwc, ((0, 0), (1, 1), (1, 1), (0, 0)))           # (n, h+2, w+2, cin)
    # Halo row-tiles: tile t holds padded rows [t*tile_h, t*tile_h + tile_h + 2).
    # Blow-up is only (tile_h+2)/tile_h on the (small) input, vs 9x for im2col.
    x_tiles = jnp.stack(
        [xp[:, t * tile_h:t * tile_h + tile_h + 2, :, :] for t in range(n_t)],
        axis=1)                                                       # (n, n_t, tile_h+2, w+2, cin)

    # (Cout, Cin, 3, 3) -> (kh, kw, cin, cout) -> (9, cin, cout_p), bf16
    w9 = jnp.transpose(conv_w, (2, 3, 1, 0)).reshape(9, cin, cout)
    w9 = jnp.pad(w9, ((0, 0), (0, 0), (0, cout_p - cout))).astype(compute_dtype)
    b_p = jnp.pad(conv_b, (0, cout_p - cout)).reshape(1, cout_p).astype(jnp.float32)

    kernel = functools.partial(
        _conv_relu_pool_kernel,
        tile_h=tile_h, w=w, cin=cin, cout_p=cout_p, inv_hw=1.0 / hw)

    feat_flat, pooled = pl.pallas_call(
        kernel,
        out_shape=(
            jax.ShapeDtypeStruct((n, hw, cout_p), jnp.float32),
            jax.ShapeDtypeStruct((n, 1, cout_p), jnp.float32),
        ),
        grid=(n, n_t),
        in_specs=[
            pl.BlockSpec((1, 1, tile_h + 2, w + 2, cin),
                         lambda b, t: (b, t, 0, 0, 0)),
            pl.BlockSpec((9, cin, cout_p), lambda b, t: (0, 0, 0)),
            pl.BlockSpec((1, cout_p), lambda b, t: (0, 0)),
        ],
        out_specs=(
            pl.BlockSpec((1, tile_m, cout_p), lambda b, t: (b, t, 0)),
            pl.BlockSpec((1, 1, cout_p), lambda b, t: (b, 0, 0)),   # resident across t
        ),
        compiler_params=pltpu.CompilerParams(
            dimension_semantics=("parallel", "arbitrary"),
            vmem_limit_bytes=32 * 1024 * 1024),
    )(x_tiles, w9, b_p)

    # Metadata reshape + (only if Cout was padded) a channel slice back to the true Cout.
    feat = feat_flat.reshape(n, h, w, cout_p)
    pooled = pooled.reshape(n, cout_p)
    if cout_p != cout:
        feat = feat[..., :cout]
        pooled = pooled[:, :cout]
    return {"feat": feat, "feat_pooled": pooled}


if __name__ == "__main__":
    # Small shapes consistent with a 2D CNN feature extractor.
    N, C_IN, H, W = 2, 4, 16, 16
    C_OUT = 32

    key = jax.random.PRNGKey(0)
    kx, kw_key, kb = jax.random.split(key, 3)
    x = jax.random.normal(kx, (N, C_IN, H, W), dtype=jnp.float32)
    conv_w = jax.random.normal(kw_key, (C_OUT, C_IN, 3, 3), dtype=jnp.float32) * 0.1
    conv_b = jax.random.normal(kb, (C_OUT,), dtype=jnp.float32) * 0.1

    # tile_h=8 -> 2 row-tiles per batch, exercising the pooled-accumulator path.
    fwd = jax.jit(functools.partial(cnn2d_forward, tile_h=8))
    out = fwd(x, conv_w, conv_b)
    jax.block_until_ready(out)

    # Pure-JAX reference with the same bf16 operand quantization (f32 accumulate).
    xq = x.astype(jnp.bfloat16).astype(jnp.float32)
    wq = conv_w.astype(jnp.bfloat16).astype(jnp.float32)
    x_nhwc = jnp.transpose(xq, (0, 2, 3, 1))
    feat_ref = lax.conv_general_dilated(
        x_nhwc, jnp.transpose(wq, (2, 3, 1, 0)),
        window_strides=(1, 1), padding="SAME",
        dimension_numbers=("NHWC", "HWIO", "NHWC"),
        precision=lax.Precision.HIGHEST)
    feat_ref = jnp.maximum(feat_ref + conv_b, 0.0)
    pooled_ref = feat_ref.mean(axis=(1, 2))

    assert out["feat"].shape == (N, H, W, C_OUT)
    assert out["feat_pooled"].shape == (N, C_OUT)
    assert jnp.allclose(out["feat"], feat_ref, atol=1e-3, rtol=1e-3)
    assert jnp.allclose(out["feat_pooled"], pooled_ref, atol=1e-3, rtol=1e-3)

    print("KERNEL_OK")
</pallas_src>

<mosaic_0001>
module attributes {stable_mosaic.version = 11 : i64} {
  func.func @_conv_relu_pool_kernel(%arg0: i32, %arg1: i32, %arg2: memref<1x1x10x18x4xbf16, #tpu.memory_space<vmem>>, %arg3: memref<9x4x128xbf16, #tpu.memory_space<vmem>>, %arg4: memref<1x128xf32, #tpu.memory_space<vmem>>, %arg5: memref<1x128x128xf32, #tpu.memory_space<vmem>>, %arg6: memref<1x1x128xf32, #tpu.memory_space<vmem>>) attributes {dimension_semantics = [#tpu.dimension_semantics<parallel>, #tpu.dimension_semantics<arbitrary>], iteration_bounds = array<i64: 2, 2>, scalar_prefetch = 0 : i64, scratch_operands = 0 : i64, tpu.core_type = #tpu.core_type<tc>, window_params = [{transform_indices = @transform_0, window_bounds = array<i64: 1, 1, 10, 18, 4>}, {pipeline_mode = #tpu.pipeline_mode<synchronous>, transform_indices = @transform_1, window_bounds = array<i64: 9, 4, 128>}, {pipeline_mode = #tpu.pipeline_mode<synchronous>, transform_indices = @transform_2, window_bounds = array<i64: 1, 128>}, {transform_indices = @transform_3, window_bounds = array<i64: 1, 128, 128>}, {transform_indices = @transform_4, window_bounds = array<i64: 1, 1, 128>}]} {
    %c0 = arith.constant 0 : index
    %c0_0 = arith.constant 0 : index
    %c0_1 = arith.constant 0 : index
    %c0_2 = arith.constant 0 : index
    %c0_3 = arith.constant 0 : index
    %0 = vector.load %arg2[%c0, %c0_0, %c0_1, %c0_2, %c0_3] : memref<1x1x10x18x4xbf16, #tpu.memory_space<vmem>>, vector<1x1x10x18x4xbf16>
    %1 = vector.shape_cast %0 : vector<1x1x10x18x4xbf16> to vector<10x18x4xbf16>
    %cst = arith.constant 0.000000e+00 : f32
    %2 = vector.broadcast %cst : f32 to vector<128x128xf32>
    %3 = vector.extract_strided_slice %1 {offsets = [0, 0, 0], sizes = [8, 16, 4], strides = [1, 1, 1]} : vector<10x18x4xbf16> to vector<8x16x4xbf16>
    %4 = vector.shape_cast %3 : vector<8x16x4xbf16> to vector<128x4xbf16>
    %c0_4 = arith.constant 0 : index
    %c0_5 = arith.constant 0 : index
    %c0_6 = arith.constant 0 : index
    %5 = vector.load %arg3[%c0_4, %c0_5, %c0_6] : memref<9x4x128xbf16, #tpu.memory_space<vmem>>, vector<1x4x128xbf16>
    %6 = vector.shape_cast %5 : vector<1x4x128xbf16> to vector<4x128xbf16>
    %cst_7 = arith.constant dense<0.000000e+00> : vector<128x128xf32>
    %7 = tpu.matmul %4, %6, %cst_7 {dimension_numbers = #tpu.dot_dimension_numbers<[1], [0], [0], [1], [0, 0, 1, 1], [], []>} : vector<128x4xbf16>, vector<4x128xbf16>, vector<128x128xf32> -> vector<128x128xf32>
    %8 = arith.addf %2, %7 : vector<128x128xf32>
    %9 = vector.extract_strided_slice %1 {offsets = [0, 1, 0], sizes = [8, 16, 4], strides = [1, 1, 1]} : vector<10x18x4xbf16> to vector<8x16x4xbf16>
    %10 = vector.shape_cast %9 : vector<8x16x4xbf16> to vector<128x4xbf16>
    %c1 = arith.constant 1 : index
    %c0_8 = arith.constant 0 : index
    %c0_9 = arith.constant 0 : index
    %11 = vector.load %arg3[%c1, %c0_8, %c0_9] : memref<9x4x128xbf16, #tpu.memory_space<vmem>>, vector<1x4x128xbf16>
    %12 = vector.shape_cast %11 : vector<1x4x128xbf16> to vector<4x128xbf16>
    %cst_10 = arith.constant dense<0.000000e+00> : vector<128x128xf32>
    %13 = tpu.matmul %10, %12, %cst_10 {dimension_numbers = #tpu.dot_dimension_numbers<[1], [0], [0], [1], [0, 0, 1, 1], [], []>} : vector<128x4xbf16>, vector<4x128xbf16>, vector<128x128xf32> -> vector<128x128xf32>
    %14 = arith.addf %8, %13 : vector<128x128xf32>
    %15 = vector.extract_strided_slice %1 {offsets = [0, 2, 0], sizes = [8, 16, 4], strides = [1, 1, 1]} : vector<10x18x4xbf16> to vector<8x16x4xbf16>
    %16 = vector.shape_cast %15 : vector<8x16x4xbf16> to vector<128x4xbf16>
    %c2 = arith.constant 2 : index
    %c0_11 = arith.constant 0 : index
    %c0_12 = arith.constant 0 : index
    %17 = vector.load %arg3[%c2, %c0_11, %c0_12] : memref<9x4x128xbf16, #tpu.memory_space<vmem>>, vector<1x4x128xbf16>
    %18 = vector.shape_cast %17 : vector<1x4x128xbf16> to vector<4x128xbf16>
    %cst_13 = arith.constant dense<0.000000e+00> : vector<128x128xf32>
    %19 = tpu.matmul %16, %18, %cst_13 {dimension_numbers = #tpu.dot_dimension_numbers<[1], [0], [0], [1], [0, 0, 1, 1], [], []>} : vector<128x4xbf16>, vector<4x128xbf16>, vector<128x128xf32> -> vector<128x128xf32>
    %20 = arith.addf %14, %19 : vector<128x128xf32>
    %21 = vector.extract_strided_slice %1 {offsets = [1, 0, 0], sizes = [8, 16, 4], strides = [1, 1, 1]} : vector<10x18x4xbf16> to vector<8x16x4xbf16>
    %22 = vector.shape_cast %21 : vector<8x16x4xbf16> to vector<128x4xbf16>
    %c3 = arith.constant 3 : index
    %c0_14 = arith.constant 0 : index
    %c0_15 = arith.constant 0 : index
    %23 = vector.load %arg3[%c3, %c0_14, %c0_15] : memref<9x4x128xbf16, #tpu.memory_space<vmem>>, vector<1x4x128xbf16>
    %24 = vector.shape_cast %23 : vector<1x4x128xbf16> to vector<4x128xbf16>
    %cst_16 = arith.constant dense<0.000000e+00> : vector<128x128xf32>
    %25 = tpu.matmul %22, %24, %cst_16 {dimension_numbers = #tpu.dot_dimension_numbers<[1], [0], [0], [1], [0, 0, 1, 1], [], []>} : vector<128x4xbf16>, vector<4x128xbf16>, vector<128x128xf32> -> vector<128x128xf32>
    %26 = arith.addf %20, %25 : vector<128x128xf32>
    %27 = vector.extract_strided_slice %1 {offsets = [1, 1, 0], sizes = [8, 16, 4], strides = [1, 1, 1]} : vector<10x18x4xbf16> to vector<8x16x4xbf16>
    %28 = vector.shape_cast %27 : vector<8x16x4xbf16> to vector<128x4xbf16>
    %c4 = arith.constant 4 : index
    %c0_17 = arith.constant 0 : index
    %c0_18 = arith.constant 0 : index
    %29 = vector.load %arg3[%c4, %c0_17, %c0_18] : memref<9x4x128xbf16, #tpu.memory_space<vmem>>, vector<1x4x128xbf16>
    %30 = vector.shape_cast %29 : vector<1x4x128xbf16> to vector<4x128xbf16>
    %cst_19 = arith.constant dense<0.000000e+00> : vector<128x128xf32>
    %31 = tpu.matmul %28, %30, %cst_19 {dimension_numbers = #tpu.dot_dimension_numbers<[1], [0], [0], [1], [0, 0, 1, 1], [], []>} : vector<128x4xbf16>, vector<4x128xbf16>, vector<128x128xf32> -> vector<128x128xf32>
    %32 = arith.addf %26, %31 : vector<128x128xf32>
    %33 = vector.extract_strided_slice %1 {offsets = [1, 2, 0], sizes = [8, 16, 4], strides = [1, 1, 1]} : vector<10x18x4xbf16> to vector<8x16x4xbf16>
    %34 = vector.shape_cast %33 : vector<8x16x4xbf16> to vector<128x4xbf16>
    %c5 = arith.constant 5 : index
    %c0_20 = arith.constant 0 : index
    %c0_21 = arith.constant 0 : index
    %35 = vector.load %arg3[%c5, %c0_20, %c0_21] : memref<9x4x128xbf16, #tpu.memory_space<vmem>>, vector<1x4x128xbf16>
    %36 = vector.shape_cast %35 : vector<1x4x128xbf16> to vector<4x128xbf16>
    %cst_22 = arith.constant dense<0.000000e+00> : vector<128x128xf32>
    %37 = tpu.matmul %34, %36, %cst_22 {dimension_numbers = #tpu.dot_dimension_numbers<[1], [0], [0], [1], [0, 0, 1, 1], [], []>} : vector<128x4xbf16>, vector<4x128xbf16>, vector<128x128xf32> -> vector<128x128xf32>
    %38 = arith.addf %32, %37 : vector<128x128xf32>
    %39 = vector.extract_strided_slice %1 {offsets = [2, 0, 0], sizes = [8, 16, 4], strides = [1, 1, 1]} : vector<10x18x4xbf16> to vector<8x16x4xbf16>
    %40 = vector.shape_cast %39 : vector<8x16x4xbf16> to vector<128x4xbf16>
    %c6 = arith.constant 6 : index
    %c0_23 = arith.constant 0 : index
    %c0_24 = arith.constant 0 : index
    %41 = vector.load %arg3[%c6, %c0_23, %c0_24] : memref<9x4x128xbf16, #tpu.memory_space<vmem>>, vector<1x4x128xbf16>
    %42 = vector.shape_cast %41 : vector<1x4x128xbf16> to vector<4x128xbf16>
    %cst_25 = arith.constant dense<0.000000e+00> : vector<128x128xf32>
    %43 = tpu.matmul %40, %42, %cst_25 {dimension_numbers = #tpu.dot_dimension_numbers<[1], [0], [0], [1], [0, 0, 1, 1], [], []>} : vector<128x4xbf16>, vector<4x128xbf16>, vector<128x128xf32> -> vector<128x128xf32>
    %44 = arith.addf %38, %43 : vector<128x128xf32>
    %45 = vector.extract_strided_slice %1 {offsets = [2, 1, 0], sizes = [8, 16, 4], strides = [1, 1, 1]} : vector<10x18x4xbf16> to vector<8x16x4xbf16>
    %46 = vector.shape_cast %45 : vector<8x16x4xbf16> to vector<128x4xbf16>
    %c7 = arith.constant 7 : index
    %c0_26 = arith.constant 0 : index
    %c0_27 = arith.constant 0 : index
    %47 = vector.load %arg3[%c7, %c0_26, %c0_27] : memref<9x4x128xbf16, #tpu.memory_space<vmem>>, vector<1x4x128xbf16>
    %48 = vector.shape_cast %47 : vector<1x4x128xbf16> to vector<4x128xbf16>
    %cst_28 = arith.constant dense<0.000000e+00> : vector<128x128xf32>
    %49 = tpu.matmul %46, %48, %cst_28 {dimension_numbers = #tpu.dot_dimension_numbers<[1], [0], [0], [1], [0, 0, 1, 1], [], []>} : vector<128x4xbf16>, vector<4x128xbf16>, vector<128x128xf32> -> vector<128x128xf32>
    %50 = arith.addf %44, %49 : vector<128x128xf32>
    %51 = vector.extract_strided_slice %1 {offsets = [2, 2, 0], sizes = [8, 16, 4], strides = [1, 1, 1]} : vector<10x18x4xbf16> to vector<8x16x4xbf16>
    %52 = vector.shape_cast %51 : vector<8x16x4xbf16> to vector<128x4xbf16>
    %c8 = arith.constant 8 : index
    %c0_29 = arith.constant 0 : index
    %c0_30 = arith.constant 0 : index
    %53 = vector.load %arg3[%c8, %c0_29, %c0_30] : memref<9x4x128xbf16, #tpu.memory_space<vmem>>, vector<1x4x128xbf16>
    %54 = vector.shape_cast %53 : vector<1x4x128xbf16> to vector<4x128xbf16>
    %cst_31 = arith.constant dense<0.000000e+00> : vector<128x128xf32>
    %55 = tpu.matmul %52, %54, %cst_31 {dimension_numbers = #tpu.dot_dimension_numbers<[1], [0], [0], [1], [0, 0, 1, 1], [], []>} : vector<128x4xbf16>, vector<4x128xbf16>, vector<128x128xf32> -> vector<128x128xf32>
    %56 = arith.addf %50, %55 : vector<128x128xf32>
    %c0_32 = arith.constant 0 : index
    %c0_33 = arith.constant 0 : index
    %57 = vector.load %arg4[%c0_32, %c0_33] : memref<1x128xf32, #tpu.memory_space<vmem>>, vector<1x128xf32>
    %58 = vector.broadcast %57 : vector<1x128xf32> to vector<128x128xf32>
    %59 = arith.addf %56, %58 : vector<128x128xf32>
    %cst_34 = arith.constant 0.000000e+00 : f32
    %60 = vector.broadcast %cst_34 : f32 to vector<128x128xf32>
    %61 = arith.maximumf %59, %60 : vector<128x128xf32>
    %62 = vector.shape_cast %61 : vector<128x128xf32> to vector<1x128x128xf32>
    %c0_35 = arith.constant 0 : index
    %c0_36 = arith.constant 0 : index
    %c0_37 = arith.constant 0 : index
    %63 = vector.load %arg5[%c0_35, %c0_36, %c0_37] : memref<1x128x128xf32, #tpu.memory_space<vmem>>, vector<1x128x128xf32>
    tpu.vector_store %arg5[%c0_35, %c0_36, %c0_37], %62 {strides = array<i32>} : memref<1x128x128xf32, #tpu.memory_space<vmem>>, vector<1x128x128xf32>,
    %c0_i32 = arith.constant 0 : i32
    %64 = arith.cmpi eq, %arg1, %c0_i32 : i32
    %65 = arith.extui %64 : i1 to i32
    %c0_i32_38 = arith.constant 0 : i32
    %66 = arith.cmpi ne, %65, %c0_i32_38 : i32
    scf.if %66 {
      %cst_47 = arith.constant 0.000000e+00 : f32
      %75 = vector.broadcast %cst_47 : f32 to vector<1x1x128xf32>
      %c0_48 = arith.constant 0 : index
      %c0_49 = arith.constant 0 : index
      %c0_50 = arith.constant 0 : index
      %76 = vector.load %arg6[%c0_48, %c0_49, %c0_50] : memref<1x1x128xf32, #tpu.memory_space<vmem>>, vector<1x1x128xf32>
      tpu.vector_store %arg6[%c0_48, %c0_49, %c0_50], %75 {strides = array<i32>} : memref<1x1x128xf32, #tpu.memory_space<vmem>>, vector<1x1x128xf32>,
    } else {
    }
    %c0_39 = arith.constant 0 : index
    %c0_40 = arith.constant 0 : index
    %c0_41 = arith.constant 0 : index
    %67 = vector.load %arg6[%c0_39, %c0_40, %c0_41] : memref<1x1x128xf32, #tpu.memory_space<vmem>>, vector<1x1x128xf32>
    %cst_42 = arith.constant dense<0.000000e+00> : vector<128xf32>
    %68 = vector.multi_reduction <add>, %61, %cst_42 [0] : vector<128x128xf32> to vector<128xf32>
    %69 = vector.shape_cast %68 : vector<128xf32> to vector<1x1x128xf32>
    %70 = arith.addf %67, %69 : vector<1x1x128xf32>
    %c0_43 = arith.constant 0 : index
    %c0_44 = arith.constant 0 : index
    %c0_45 = arith.constant 0 : index
    %71 = vector.load %arg6[%c0_43, %c0_44, %c0_45] : memref<1x1x128xf32, #tpu.memory_space<vmem>>, vector<1x1x128xf32>
    tpu.vector_store %arg6[%c0_43, %c0_44, %c0_45], %70 {strides = array<i32>} : memref<1x1x128xf32, #tpu.memory_space<vmem>>, vector<1x1x128xf32>,
    %c1_i32 = arith.constant 1 : i32
    %72 = arith.cmpi eq, %arg1, %c1_i32 : i32
    %73 = arith.extui %72 : i1 to i32
    %c0_i32_46 = arith.constant 0 : i32
    %74 = arith.cmpi ne, %73, %c0_i32_46 : i32
    scf.if %74 {
      %c0_47 = arith.constant 0 : index
      %c0_48 = arith.constant 0 : index
      %c0_49 = arith.constant 0 : index
      %75 = vector.load %arg6[%c0_47, %c0_48, %c0_49] : memref<1x1x128xf32, #tpu.memory_space<vmem>>, vector<1x1x128xf32>
      %cst_50 = arith.constant 3.906250e-03 : f32
      %76 = vector.broadcast %cst_50 : f32 to vector<1x1x128xf32>
      %77 = arith.mulf %75, %76 : vector<1x1x128xf32>
      %c0_51 = arith.constant 0 : index
      %c0_52 = arith.constant 0 : index
      %c0_53 = arith.constant 0 : index
      %78 = vector.load %arg6[%c0_51, %c0_52, %c0_53] : memref<1x1x128xf32, #tpu.memory_space<vmem>>, vector<1x1x128xf32>
      tpu.vector_store %arg6[%c0_51, %c0_52, %c0_53], %77 {strides = array<i32>} : memref<1x1x128xf32, #tpu.memory_space<vmem>>, vector<1x1x128xf32>,
    } else {
    }
    return
  }
  func.func @transform_0(%arg0: i32, %arg1: i32) -> (i32, i32, i32, i32, i32) {
    %c0_i32 = arith.constant 0 : i32
    %c0_i32_0 = arith.constant 0 : i32
    %c0_i32_1 = arith.constant 0 : i32
    %c0_i32_2 = arith.constant 0 : i32
    return %arg0, %arg1, %c0_i32, %c0_i32_0, %c0_i32_1 : i32, i32, i32, i32, i32
  }
  func.func @transform_1(%arg0: i32, %arg1: i32) -> (i32, i32, i32) {
    %c0_i32 = arith.constant 0 : i32
    %c0_i32_0 = arith.constant 0 : i32
    %c0_i32_1 = arith.constant 0 : i32
    %c0_i32_2 = arith.constant 0 : i32
    return %c0_i32, %c0_i32_0, %c0_i32_1 : i32, i32, i32
  }
  func.func @transform_2(%arg0: i32, %arg1: i32) -> (i32, i32) {
    %c0_i32 = arith.constant 0 : i32
    %c0_i32_0 = arith.constant 0 : i32
    %c0_i32_1 = arith.constant 0 : i32
    return %c0_i32, %c0_i32_0 : i32, i32
  }
  func.func @transform_3(%arg0: i32, %arg1: i32) -> (i32, i32, i32) {
    %c0_i32 = arith.constant 0 : i32
    %c0_i32_0 = arith.constant 0 : i32
    return %arg0, %arg1, %c0_i32 : i32, i32, i32
  }
  func.func @transform_4(%arg0: i32, %arg1: i32) -> (i32, i32, i32) {
    %c0_i32 = arith.constant 0 : i32
    %c0_i32_0 = arith.constant 0 : i32
    %c0_i32_1 = arith.constant 0 : i32
    return %arg0, %c0_i32, %c0_i32_0 : i32, i32, i32
  }
}

</mosaic_0001>

<bundles_post_ra>
// kernel: cnn2d_forward.1
= control target key start
LH: loop header
LB: loop body
LE: loop exit
PB: predicated region body
PF: predicated region fallthrough
CT: control target
= control target key end

     0   :  { %s3805_s0 = inlined_call_operand.vmem [shape: bf16[2,2,10,18,4], index: 0, kind: input, shape index: {}]   ;;  %s3806_s1 = inlined_call_operand.vmem [shape: bf16[9,4,128], index: 1, kind: input, shape index: {}]   ;;  %s3807_s2 = inlined_call_operand.vmem [shape: f32[1,128], index: 2, kind: input, shape index: {}]   ;;  %s3808_s3 = inlined_call_operand.hbm [shape: f32[2,256,128], index: 3, kind: output, shape index: {0}]   ;;  %s3809_s4 = inlined_call_operand.hbm [shape: f32[2,1,128], index: 4, kind: output, shape index: {1}]  }
   0x1   :  { %3815 = sst [smem:[#allocation36_spill]] %s3805_s0 }
   0x2   :  { %3816 = sst [smem:[#allocation37_spill]] %s3806_s1 }
   0x3   :  { %3817 = sst [smem:[#allocation38_spill]] %s3807_s2 }
   0x4   :  { %10 = vsyncpa [#allocation3], 0 }
   0x5   :  { %12 = vsyncpa [#allocation3 + $0x1], 0 }
   0x6   :  { %13 = vsyncpa [#allocation5], 0 }
   0x7   :  { %15 = vsyncpa [#allocation5 + $0x1], 0  ;;  %s2745_s15 = smov 0   ;;  %s2747_s16 = smov 0  }
   0x8   :  { %s2749_s17 = smov 0   ;;  %s2751_s18 = smov 0  }
   0x9   :  { %s2753_s19 = smov 0   ;;  %s2755_s20 = smov 0  }
   0xa   :  { %s2757_s21 = smov 0   ;;  %s2759_s22 = smov 0  }
   0xb   :  { %s2761_s23 = smov 0   ;;  %s2763_s24 = smov 0  }
   0xc   :  { %s2765_s25 = smov 0  }
   0xd LB: > { %3818 = sst [smem:[#allocation8_spill]] %s2693_s20  ;;  %s2060_s26 = sadd.s32 4294967295, %s2713_s25   ;;  %s2713_s25 = sphi %s2765_s25, %s21_s25   ;;  %s2709_s24 = sphi %s2763_s24, %s3889_s24   ;;  %s2705_s23 = sphi %s2761_s23, %s3888_s23   ;;  %s2701_s22 = sphi %s2759_s22, %s3887_s22   ;;  %s2697_s21 = sphi %s2757_s21, %s3886_s21   ;;  %s2693_s20 = sphi %s2755_s20, %s3885_s20   ;;  %s2689_s19 = sphi %s2753_s19, %s3894_s19   ;;  %s2685_s18 = sphi %s2751_s18, %s3893_s18   ;;  %s2681_s17 = sphi %s2749_s17, %s3892_s17   ;;  %s2677_s16 = sphi %s2747_s16, %s3891_s16   ;;  %s2673_s15 = sphi %s2745_s15, %s3890_s15  }
   0xe   : > { %3819 = sst [smem:[#allocation9_spill]] %s2705_s23  ;;  %s2061_s27 = sadd.s32 4294967294, %s2713_s25  }
   0xf   : > { %3820 = sst [smem:[#allocation10_spill]] %s2709_s24  ;;  %s30_s28 = sadd.s32 1, %s2705_s23 }
  0x10   : > { %s33_s29 = sadd.s32 1, %s2709_s24  ;;  %p31_p0 = scmp.ge.s32.totalorder %s30_s28, 2 }
  0x11   : > { %s112_s30 = sadd.s32 1, %s2693_s20  ;;  %p122_p1 = scmp.ne.s32.totalorder %s2693_s20, %s2689_s19 }
  0x12   : > { %p2807_p2 = scmp.eq.s32.totalorder %s2060_s26, 3  ;;  %s3896_s28 = smov (%p31_p0, %s30_s28), 0 }
  0x13   : > { %3822 = sst [smem:[#allocation11_spill]] %s3896_s28  ;;  %s3898_s29 = smov (!%p31_p0, %s33_s29), %s2709_s24 }
  0x14   : > { %s108_s6 = ssub.s32 %s2705_s23, %s3896_s28  ;;  %p2818_p3 = por %p2807_p2, %p122_p1 }
  0x15   : > { %p35_p4 = scmp.ge.s32.totalorder %s3898_s29, 2  ;;  %p128_p5 = scmp.ne.s32.totalorder %s2689_s19, %s2685_s18 }
  0x16   : > { %p2824_p6 = scmp.eq.s32.totalorder %s2061_s27, 3  ;;  %s138_s9 = sadd.s32 1, %s2681_s17 }
  0x17   : > { %s3900_s29 = smov (%p35_p4, %s3898_s29), 0  ;;  %p148_p8 = scmp.ne.s32.totalorder %s2681_s17, %s2677_s16 }
  0x18   : > { %3825 = sst [smem:[#allocation12_spill]] %s3900_s29  ;;  %p2833_p7 = por %p2824_p6, %p128_p5 }
  0x19   : > { %s107_s11 = ssub.s32 %s2709_s24, %s3900_s29  ;;  %p154_p9 = scmp.ne.s32.totalorder %s2677_s16, %s2673_s15 }
  0x1a   : > { %s109_s12 = sor.u32 %s108_s6, %s107_s11  ;;  %p136_p10 = scmp.eq.s32.totalorder %s107_s11, 0 }
  0x1b   : > { %p110_p11 = scmp.eq.s32.totalorder %s109_s12, 0  ;;  %p2845_p12 = por %p148_p8, %p2807_p2 }
  0x1c   : > { %s2850_s14 = scalar_select %p136_p10, %s2681_s17, %s138_s9  }
  0x1d   : > { %s2853_s26 = scalar_select %p110_p11, %s2693_s20, %s112_s30  }
  0x1e   : > { %p2857_p13 = por %p154_p9, %p2824_p6  ;;  %p2064_p0 = scmp.ge.s32.totalorder %s2713_s25, 1 }
  0x1f   : > { %3828 = sst [smem:[#allocation13_spill]] %s2853_s26  ;;  %p191_p1 = scmp.lt.s32.totalorder %s2713_s25, 5 }
  0x20   : > { %s3829_s27 = scalar_select %p2857_p13, 1, 0 }
  0x21   : > { %p192_p4 = pnand %p2064_p0, %p191_p1 }
  0x23   : > { %195 = sbr.rel (%p192_p4) target bundleno = 534 (0x216), region = 32 }
  0x28   : > { %s3830_s1 = sld [smem:[#allocation37_spill]]  ;;  %vm513_vm0 = vcmask 1041408   ;;  %p225_p2 = scmp.lt.s32.totalorder %s2701_s22, 1  ;;  %vm267_vm1 = vsmask.f32 3328  ;;  %vm488_vm3 = vcmask 31744  }
  0x29   : > { %p227_p5 = scmp.lt.s32.totalorder %s2697_s21, 1  ;;  %s3831_s0 = sld [smem:[#allocation36_spill]]  ;;  %vm268_vm2 = vsmask.f32 7440  ;;  %vm786_vm5 = vcmask 1042432   ;;  %vm787_vm6 = vcmask 1046532  }
  0x2a   : > { %s226_s5 = scalar_select %p225_p2, %s2701_s22, 1  ;;  %vm2926_vm4 = vmor %vm267_vm1, %vm268_vm2 }
  0x2b   : > { %s228_s12 = scalar_select %p227_p5, %s2697_s21, 1  ;;  %vm3074_vm7 = vmor %vm786_vm5, %vm787_vm6 }
  0x2c   : > { %s2453_s30 = smul.u32 60, %s226_s5  ;;  %s216_s11 = sand.u32 1, %s2689_s19  }
  0x2d   : > { %s2452_s29 = smul.u32 30, %s228_s12  ;;  %s3858_s2 = sld [smem:[#allocation38_spill]] }
  0x2e   : > { %v2067_v0 = vld [vmem:[%s3830_s1 + $0x2] sm:$0x3]  ;;  %v266_v2 = vld [vmem:[%s3830_s1] sm:$0x3]  ;;  %v2108_v3 = vld [vmem:[%s3830_s1 + $0x4] sm:$0x3] }
  0x2f   : > { %2443 = vmatprep.subr.msk.bf16.mxu1 %vm513_vm0, %v2067_v0  ;;  %2442 = vmatprep.subr.msk.bf16.mxu0 %vm513_vm0, %v2067_v0  ;;  %v515_v1 = vsel %vm513_vm0, %v2067_v0, 0  ;;  %s231_s28 = sadd.s32 %s2453_s30, %s2452_s29  ;;  %v2911_v15 = vsel %vm513_vm0, %v266_v2, 0  ;;  %v2931_v34 = vsel %vm513_vm0, %v2108_v3, 0  ;;  %s3881_s26 = sand.u32 1, %s2677_s16  }
  0x30   : > { %2441 = vmatpush3.bf16.msra.mxu1 %v515_v1  ;;  %2279 = vmatpush3.bf16.msra.mxu0 %v515_v1  ;;  %s2066_s24 = sshll.u32 %s231_s28, 2  ;;  %s2065_s28 = sshll.u32 %s216_s11, 7 }
  0x31   : > { %2444 = vmatprep.subr.msk.bf16.mxu1 %vm513_vm0, %v266_v2  ;;  %2445 = vmatprep.subr.msk.bf16.mxu0 %vm513_vm0, %v2108_v3  ;;  %s2885_s20 = scalar_lea.vmem %s3831_s0, %s2066_s24  ;;  %s3579_s29 = scalar_lea.vmem [#allocation2], %s2065_s28 }
  0x32   : > { %v2888_v4 = vld [vmem:[%s2885_s20] sm:$0xf]  ;;  %v2891_v5 = vld [vmem:[%s2885_s20 + $0x4] sm:$0xf]  ;;  %v2894_v6 = vld [vmem:[%s2885_s20 + $0x8] sm:$0x1] }
  0x33   : > { %v271_v7 = vshrl.u32 %v2888_v4, 16  ;;  %v274_v8 = vshll.u32 %v2888_v4, 16  ;;  %v280_v9 = vshll.u32 %v2891_v5, 16  ;;  %v284_v10 = vshrl.u32 %v2891_v5, 16  ;;  %v2901_v11 = vld [vmem:[%s2885_s20 + $0x30] sm:$0xf] }
  0x34   : > { %v290_v12 = vshll.u32 %v2894_v6, 16  ;;  %v2905_v13 = vld [vmem:[%s2885_s20 + $0x34] sm:$0xf]  ;;  %v2908_v14 = vld [vmem:[%s2885_s20 + $0x38] sm:$0x1]  ;;  %v367_v21 = vshrl.u32 %v2901_v11, 16 }
  0x35   : > { %v273_v16 = vrot.slane %v271_v7, 4  ;;  %v276_v17 = vrot.slane %v274_v8, 5  ;;  %v282_v18 = vrot.slane %v280_v9, 5  ;;  %v286_v19 = vrot.slane %v284_v10, 4  ;;  %v2919_v28 = vld [vmem:[%s2885_s20 + $0xc] sm:$0xf] }
  0x36   : > { %v292_v20 = vrot.slane %v290_v12, 5  ;;  %v370_v22 = vshll.u32 %v2901_v11, 16  ;;  %v376_v23 = vshll.u32 %v2905_v13, 16  ;;  %v380_v26 = vshrl.u32 %v2905_v13, 16  ;;  %v2922_v29 = vld [vmem:[%s2885_s20 + $0x10] sm:$0xf] }
  0x37   : > { %v277_v24 = vor.u32 %v276_v17, %v273_v16  ;;  %v287_v25 = vor.u32 %v286_v19, %v282_v18  ;;  %v386_v27 = vshll.u32 %v2908_v14, 16  ;;  %v369_v31 = vrot.slane %v367_v21, 4  ;;  %v2934_v40 = vld [vmem:[%s2885_s20 + $0x14] sm:$0x1]  ;;  %v2945_v52 = vld [vmem:[%s2885_s20 + $0x3c] sm:$0xf] }
  0x38   : > { %v372_v32 = vrot.slane %v370_v22, 5  ;;  %v378_v33 = vrot.slane %v376_v23, 5  ;;  %v382_v37 = vrot.slane %v380_v26, 4  ;;  %v295_v41 = vshrl.u32 %v2919_v28, 16  ;;  %v2949_v57 = vld [vmem:[%s2885_s20 + $0x40] sm:$0xf] }
  0x39   : > { %v278_v35 = vrot.slane %v277_v24, 4  ;;  %v288_v36 = vrot.slane %v287_v25, 4  ;;  %v388_v38 = vrot.slane %v386_v27, 5  ;;  %v298_v42 = vshll.u32 %v2919_v28, 16  ;;  %v2957_v62 = vld [vmem:[%s2885_s20 + $0x44] sm:$0x1] }
  0x3a   : > { %v373_v39 = vor.u32 %v372_v32, %v369_v31  ;;  %v304_v43 = vshll.u32 %v2922_v29, 16  ;;  %v383_v46 = vor.u32 %v382_v37, %v378_v33  ;;  %v308_v47 = vshrl.u32 %v2922_v29, 16  ;;  %v2963_v3 = vld [vmem:[%s2885_s20 + $0x18] sm:$0xf]  ;;  %v2972_v19 = vld [vmem:[%s2885_s20 + $0x1c] sm:$0xf] }
  0x3b   : > { %v283_v44 = vsel %vm2926_vm4, %v278_v35, %v282_v18  ;;  %v293_v45 = vsel %vm2926_vm4, %v288_v36, %v292_v20  ;;  %v297_v50 = vrot.slane %v295_v41, 4  ;;  %v300_v51 = vrot.slane %v298_v42, 5  ;;  %v2979_v23 = vld [vmem:[%s2885_s20 + $0x20] sm:$0x1]  ;;  %v2986_v32 = vld [vmem:[%s2885_s20 + $0x48] sm:$0xf] }
  0x3c   : > { %v2068_v48 = vcombine.low %v283_v44, %v293_v45  ;;  %v374_v49 = vrot.slane %v373_v39, 4  ;;  %v384_v53 = vrot.slane %v383_v46, 4  ;;  %v306_v54 = vrot.slane %v304_v43, 5  ;;  %v2999_v44 = vld [vmem:[%s2885_s20 + $0x4c] sm:$0xf]  ;;  %s3686_s30 = scalar_lea.vmem [#allocation4], %s3881_s26 }
  0x3d   : > { %v310_v55 = vrot.slane %v308_v47, 4  ;;  %v314_v56 = vshll.u32 %v2934_v40, 16  ;;  %v794_v58 = vrot.slane %v2894_v6, 5  ;;  %v301_v60 = vor.u32 %v300_v51, %v297_v50  ;;  %p2188_p6 = scmp.ne.s32.totalorder %s2697_s21, 0 }
  0x3e   : > { %2280 = vmatprep.mubr.msk.bf16.mxu0 %vm488_vm3, %v2068_v48  ;;  %v379_v59 = vsel %vm2926_vm4, %v374_v49, %v378_v33  ;;  %v798_v61 = vrot.slane %v2922_v29, 5  ;;  %v389_v63 = vsel %vm2926_vm4, %v384_v53, %v388_v38  ;;  %v391_v2 = vshrl.u32 %v2945_v52, 16  ;;  %v2994_v38 = vld [vmem:[%s3830_s1 + $0x8] sm:$0x3] }
  0x3f   : > { %v311_v0 = vor.u32 %v310_v55, %v306_v54  ;;  %v316_v1 = vrot.slane %v314_v56, 5  ;;  %v2965_v7 = vcombine.low %v379_v59, %v389_v63  ;;  %v302_v8 = vrot.slane %v301_v60, 4  ;;  %v3013_v63 = vld [vmem:[%s2885_s20 + $0x24] sm:$0xf] }
  0x40   : > { %v394_v9 = vshll.u32 %v2945_v52, 16  ;;  %v400_v10 = vshll.u32 %v2949_v57, 16  ;;  %v393_v16 = vrot.slane %v391_v2, 4  ;;  %v404_v17 = vshrl.u32 %v2949_v57, 16 }
  0x41   : > { %v312_v12 = vrot.slane %v311_v0, 4  ;;  %v410_v18 = vshll.u32 %v2957_v62, 16  ;;  %2288 = vmatprep.mubr.msk.bf16.mxu1 %vm488_vm3, %v2965_v7  ;;  %v307_v20 = vsel %vm2926_vm4, %v302_v8, %v306_v54  ;;  %v319_v24 = vshrl.u32 %v2963_v3, 16  ;;  %v3007_v54 = vld [vmem:[%s2885_s20 + $0x50] sm:$0x1] }
  0x42   : > { %v396_v21 = vrot.slane %v394_v9, 5  ;;  %v402_v22 = vrot.slane %v400_v10, 5  ;;  %v406_v26 = vrot.slane %v404_v17, 4  ;;  %v322_v31 = vshll.u32 %v2963_v3, 16  ;;  %v3021_v8 = vld [vmem:[%s2885_s20 + $0x28] sm:$0xf] }
  0x43   : > { %v317_v25 = vsel %vm2926_vm4, %v312_v12, %v316_v1  ;;  %v412_v27 = vrot.slane %v410_v18, 5  ;;  %v321_v36 = vrot.slane %v319_v24, 4  ;;  %v328_v37 = vshll.u32 %v2972_v19, 16  ;;  %v3029_v17 = vld [vmem:[%s3830_s1 + $0x6] sm:$0x3] }
  0x44   : > { %v2988_v33 = vcombine.low %v307_v20, %v317_v25  ;;  %v397_v35 = vor.u32 %v396_v21, %v393_v16  ;;  %v407_v39 = vor.u32 %v406_v26, %v402_v22  ;;  %v324_v41 = vrot.slane %v322_v31, 5 }
  0x45   : > { %v332_v42 = vshrl.u32 %v2972_v19, 16  ;;  %v338_v43 = vshll.u32 %v2979_v23, 16  ;;  %v330_v46 = vrot.slane %v328_v37, 5  ;;  %v415_v47 = vshrl.u32 %v2986_v32, 16 }
  0x46   : > { %2281 = vmatmul.mubr.msk.bf16.vlgmr.msra.gmra.mxu0 %vm488_vm3, %v2988_v33  ;;  %v398_v45 = vrot.slane %v397_v35, 4  ;;  %v418_v48 = vshll.u32 %v2986_v32, 16  ;;  %v408_v49 = vrot.slane %v407_v39, 4  ;;  %v325_v50 = vor.u32 %v324_v41, %v321_v36  ;;  %v3042_v35 = vld [vmem:[%s2885_s20 + $0x54] sm:$0xf] }
  0x47   : > { %2315 = vmatpush3.bf16.msra.mxu0 %v2931_v34  ;;  %v334_v51 = vrot.slane %v332_v42, 4  ;;  %v340_v53 = vrot.slane %v338_v43, 5  ;;  %v417_v56 = vrot.slane %v415_v47, 4  ;;  %v424_v60 = vshll.u32 %v2999_v44, 16  ;;  %v3049_v42 = vld [vmem:[%s2885_s20 + $0x58] sm:$0xf] }
  0x48   : > { %v403_v55 = vsel %vm2926_vm4, %v398_v45, %v402_v22  ;;  %v420_v59 = vrot.slane %v418_v48, 5  ;;  %2447 = vmatprep.subr.msk.bf16.mxu0 %vm513_vm0, %v2994_v38  ;;  %v413_v34 = vsel %vm2926_vm4, %v408_v49, %v412_v27  ;;  %v326_v0 = vrot.slane %v325_v50, 4  ;;  %v3034_v22 = vld [vmem:[%s2885_s20 + $0x2c] sm:$0x1] }
  0x49   : > { %v335_v1 = vor.u32 %v334_v51, %v330_v46  ;;  %v428_v2 = vshrl.u32 %v2999_v44, 16  ;;  %v3023_v9 = vcombine.low %v403_v55, %v413_v34  ;;  %v426_v12 = vrot.slane %v424_v60, 5 }
  0x4a   : > { %v421_v10 = vor.u32 %v420_v59, %v417_v56  ;;  %v434_v16 = vshll.u32 %v3007_v54, 16  ;;  %v331_v18 = vsel %vm2926_vm4, %v326_v0, %v330_v46  ;;  %v343_v24 = vshrl.u32 %v3013_v63, 16 }
  0x4b   : > { %v336_v20 = vrot.slane %v335_v1, 4  ;;  %v430_v21 = vrot.slane %v428_v2, 4  ;;  %2289 = vmatmul.mubr.msk.bf16.vlgmr.msra.gmra.mxu1 %vm488_vm3, %v3023_v9  ;;  %v346_v27 = vshll.u32 %v3013_v63, 16  ;;  %v352_v31 = vshll.u32 %v3021_v8, 16 }
  0x4c   : > { %v422_v25 = vrot.slane %v421_v10, 4  ;;  %v436_v26 = vrot.slane %v434_v16, 5  ;;  %2297 = vmatpush3.bf16.msra.mxu1 %v2911_v15  ;;  %v345_v39 = vrot.slane %v343_v24, 4  ;;  %v356_v41 = vshrl.u32 %v3021_v8, 16  ;;  %v2177_v24 = vld [vmem:[%s3830_s1 + $0x10] sm:$0x3] }
  0x4d   : > { %v341_v36 = vsel %vm2926_vm4, %v336_v20, %v340_v53  ;;  %v431_v37 = vor.u32 %v430_v21, %v426_v12  ;;  %v348_v46 = vrot.slane %v346_v27, 5  ;;  %v354_v47 = vrot.slane %v352_v31, 5  ;;  %2446 = vmatprep.subr.msk.bf16.mxu1 %vm513_vm0, %v3029_v17  ;;  %v3062_v53 = vld [vmem:[%s2885_s20 + $0x5c] sm:$0x1] }
  0x4e   : > { %v3051_v43 = vcombine.low %v331_v18, %v341_v36  ;;  %v427_v45 = vsel %vm2926_vm4, %v422_v25, %v426_v12  ;;  %v358_v48 = vrot.slane %v356_v41, 4  ;;  %v362_v49 = vshll.u32 %v3034_v22, 16 }
  0x4f   : > { %v432_v15 = vrot.slane %v431_v37, 4  ;;  %v439_v50 = vshrl.u32 %v3042_v35, 16  ;;  %v349_v51 = vor.u32 %v348_v46, %v345_v39  ;;  %v442_v55 = vshll.u32 %v3042_v35, 16 }
  0x50   : > { %2284 = vmatprep.mubr.msk.bf16.mxu0 %vm488_vm3, %v3051_v43  ;;  %v448_v56 = vshll.u32 %v3049_v42, 16  ;;  %v452_v59 = vshrl.u32 %v3049_v42, 16  ;;  %v359_v34 = vor.u32 %v358_v48, %v354_v47  ;;  %v364_v0 = vrot.slane %v362_v49, 5 }
  0x51   : > { %v437_v60 = vsel %vm2926_vm4, %v432_v15, %v436_v26  ;;  %v441_v1 = vrot.slane %v439_v50, 4  ;;  %v350_v10 = vrot.slane %v349_v51, 4  ;;  %v444_v12 = vrot.slane %v442_v55, 5 }
  0x52   : > { %v3069_v2 = vcombine.low %v427_v45, %v437_v60  ;;  %v450_v16 = vrot.slane %v448_v56, 5  ;;  %v360_v18 = vrot.slane %v359_v34, 4  ;;  %v454_v20 = vrot.slane %v452_v59, 4 }
  0x53   : > { %v458_v21 = vshll.u32 %v3062_v53, 16  ;;  %v2100_v25 = vrot.slane %v2888_v4, 9  ;;  %v801_v26 = vrot.slane %v2934_v40, 5  ;;  %v355_v27 = vsel %vm2926_vm4, %v350_v10, %v354_v47 }
  0x54   : > { %2292 = vmatprep.mubr.msk.bf16.mxu1 %vm488_vm3, %v3069_v2  ;;  %v445_v31 = vor.u32 %v444_v12, %v441_v1  ;;  %v791_v36 = vrot.slane %v2891_v5, 5  ;;  %v365_v37 = vsel %vm2926_vm4, %v360_v18, %v364_v0  ;;  %v455_v39 = vor.u32 %v454_v20, %v450_v16 }
  0x55   : > { %v460_v41 = vrot.slane %v458_v21, 5  ;;  %v2101_v45 = vrot.slane %v2919_v28, 9  ;;  %v3088_v46 = vcombine.low %v355_v27, %v365_v37  ;;  %v2084_v47 = vcombine.low %v2888_v4, %v2891_v5 }
  0x56   : > { %v446_v15 = vrot.slane %v445_v31, 4  ;;  %v792_v40 = vsel %vm3074_vm7, %v2100_v25, %v791_v36  ;;  %v793_v48 = vrot.slane %v791_v36, 4  ;;  %v456_v49 = vrot.slane %v455_v39, 4 }
  0x57   : > { %v799_v50 = vsel %vm3074_vm7, %v2101_v45, %v798_v61  ;;  %v800_v51 = vrot.slane %v798_v61, 4  ;;  %2285 = vmatmul.mubr.msk.bf16.gmra.mxu0 %vm488_vm3, %v3088_v46  ;;  %v2102_v4 = vrot.slane %v2963_v3, 9  ;;  %v805_v5 = vrot.slane %v2972_v19, 5 }
  0x58   : > { %v451_v55 = vsel %vm2926_vm4, %v446_v15, %v450_v16  ;;  %v795_v56 = vsel %vm3074_vm7, %v793_v48, %v794_v58  ;;  %v461_v59 = vsel %vm2926_vm4, %v456_v49, %v460_v41  ;;  %v808_v34 = vrot.slane %v2979_v23, 5 }
  0x59   : > { %v2109_v60 = vcombine.low %v792_v40, %v795_v56  ;;  %v802_v61 = vsel %vm3074_vm7, %v800_v51, %v801_v26  ;;  %v3115_v0 = vcombine.low %v451_v55, %v461_v59  ;;  %v806_v6 = vsel %vm3074_vm7, %v2102_v4, %v805_v5 }
  0x5a   : > { %v807_v1 = vrot.slane %v805_v5, 4  ;;  %v822_v58 = vrot.slane %v2908_v14, 5  ;;  %v2103_v10 = vrot.slane %v3013_v63, 9  ;;  %v812_v12 = vrot.slane %v3021_v8, 5 }
  0x5b   : > { %2316 = vmatprep.mubr.msk.bf16.mxu0 %vm488_vm3, %v2109_v60  ;;  %v815_v16 = vrot.slane %v3034_v22, 5  ;;  %2293 = vmatmul.mubr.msk.bf16.gmra.mxu1 %vm488_vm3, %v3115_v0  ;;  %v3126_v23 = vcombine.low %v799_v50, %v802_v61  ;;  %v2104_v20 = vrot.slane %v2901_v11, 9  ;;  %v819_v14 = vrot.slane %v2905_v13, 5 }
  0x5c   : > { %v809_v18 = vsel %vm3074_vm7, %v807_v1, %v808_v34  ;;  %2298 = vmatprep.mubr.msk.bf16.mxu1 %vm488_vm3, %v2084_v47  ;;  %v814_v25 = vrot.slane %v812_v12, 4  ;;  %v1170_v22 = vsel %vm513_vm0, %v2994_v38, 0  ;;  %v2105_v27 = vrot.slane %v2945_v52, 9  ;;  %v3151_v38 = vld [vmem:[%s3830_s1 + $0xc] sm:$0x3] }
  0x5d   : > { %v3133_v21 = vcombine.low %v806_v6, %v809_v18  ;;  %v821_v26 = vrot.slane %v819_v14, 4  ;;  %v826_v31 = vrot.slane %v2949_v57, 5  ;;  %v3141_v36 = vcombine.low %v2919_v28, %v2922_v29  ;;  %v3171_v47 = vld [vmem:[%s2885_s20 + $0x60] sm:$0xf] }
  0x5e   : > { %v813_v37 = vsel %vm3074_vm7, %v2103_v10, %v812_v12  ;;  %v816_v39 = vsel %vm3074_vm7, %v814_v25, %v815_v16  ;;  %v829_v41 = vrot.slane %v2957_v62, 5  ;;  %v820_v28 = vsel %vm3074_vm7, %v2104_v20, %v819_v14  ;;  %v3224_v25 = vld [vmem:[%s2885_s20 + $0x6c] sm:$0xf] }
  0x5f   : > { %2317 = vmatmul.mubr.msk.bf16.vlgmr.msra.gmra.mxu0 %vm488_vm3, %v3126_v23  ;;  %v823_v29 = vsel %vm3074_vm7, %v821_v26, %v822_v58  ;;  %v828_v45 = vrot.slane %v826_v31, 4  ;;  %v2106_v15 = vrot.slane %v2986_v32, 9  ;;  %v1022_v62 = vsel %vm513_vm0, %v3029_v17, 0 }
  0x60   : > { %2351 = vmatpush3.bf16.msra.mxu0 %v1170_v22  ;;  %v3164_v40 = vcombine.low %v2963_v3, %v2972_v19  ;;  %2320 = vmatprep.mubr.msk.bf16.mxu0 %vm488_vm3, %v3133_v21  ;;  %v833_v48 = vrot.slane %v2999_v44, 5  ;;  %v836_v49 = vrot.slane %v3007_v54, 5  ;;  %v3175_v50 = vcombine.low %v3013_v63, %v3021_v8  ;;  %v3188_v19 = vld [vmem:[%s2885_s20 + $0x64] sm:$0xf]  ;;  %v262_v54 = vld [vmem:[%s2885_s20 + $0x68] sm:$0x1] }
  0x61   : > { %v3177_v51 = vcombine.low %v813_v37, %v816_v39  ;;  %v3181_v17 = vcombine.low %v2901_v11, %v2905_v13  ;;  %v827_v3 = vsel %vm3074_vm7, %v2105_v27, %v826_v31  ;;  %2449 = vmatprep.subr.msk.bf16.mxu0 %vm513_vm0, %v3151_v38  ;;  %v3191_v55 = vcombine.low %v820_v28, %v823_v29  ;;  %v3199_v11 = vld [vmem:[%s3830_s1 + $0xa] sm:$0x3]  ;;  %v3231_v31 = vld [vmem:[%s2885_s20 + $0x70] sm:$0xf]  ;;  %v265_v29 = vld [vmem:[%s2885_s20 + $0x74] sm:$0x1] }
  0x62   : > { %v830_v63 = vsel %vm3074_vm7, %v828_v45, %v829_v41  ;;  %v835_v8 = vrot.slane %v833_v48, 4  ;;  %v840_v56 = vrot.slane %v3049_v42, 5  ;;  %v834_v13 = vsel %vm3074_vm7, %v2106_v15, %v833_v48 }
  0x63   : > { %2299 = vmatmul.mubr.msk.bf16.vlgmr.msra.gmra.mxu1 %vm488_vm3, %v3141_v36  ;;  %v2107_v4 = vrot.slane %v3042_v35, 9  ;;  %v1138_v5 = vshrl.u32 %v3171_v47, 16  ;;  %v1141_v59 = vshll.u32 %v3171_v47, 16  ;;  %v1151_v61 = vshrl.u32 %v3188_v19, 16 }
  0x64   : > { %2333 = vmatpush3.bf16.msra.mxu1 %v1022_v62  ;;  %2302 = vmatprep.mubr.msk.bf16.mxu1 %vm488_vm3, %v3164_v40  ;;  %v837_v60 = vsel %vm3074_vm7, %v835_v8, %v836_v49  ;;  %v1147_v34 = vshll.u32 %v3188_v19, 16  ;;  %v1157_v6 = vshll.u32 %v262_v54, 16  ;;  %v3214_v1 = vcombine.low %v827_v3, %v830_v63 }
  0x65   : > { %v843_v58 = vrot.slane %v3062_v53, 5  ;;  %2448 = vmatprep.subr.msk.bf16.mxu1 %vm513_vm0, %v3199_v11  ;;  %v1140_v10 = vrot.slane %v1138_v5, 4  ;;  %v1143_v12 = vrot.slane %v1141_v59, 5  ;;  %v3219_v16 = vcombine.low %v834_v13, %v837_v60 }
  0x66   : > { %v842_v18 = vrot.slane %v840_v56, 4  ;;  %v1149_v20 = vrot.slane %v1147_v34, 5  ;;  %v1153_v14 = vrot.slane %v1151_v61, 4  ;;  %v2145_v53 = vrot.slane %v3171_v47, 9 }
  0x67   : > { %2321 = vmatmul.mubr.msk.bf16.gmra.mxu0 %vm488_vm3, %v3177_v51  ;;  %v1144_v22 = vor.u32 %v1143_v12, %v1140_v10  ;;  %v1288_v26 = vrot.slane %v3188_v19, 5  ;;  %v1291_v27 = vrot.slane %v262_v54, 5  ;;  %v1159_v39 = vrot.slane %v1157_v6, 5 }
  0x68   : > { %2324 = vmatprep.mubr.msk.bf16.mxu0 %vm488_vm3, %v3191_v55  ;;  %v1154_v37 = vor.u32 %v1153_v14, %v1149_v20  ;;  %v1544_v41 = vshrl.u32 %v3224_v25, 16  ;;  %v1547_v28 = vshll.u32 %v3224_v25, 16  ;;  %v1557_v48 = vshrl.u32 %v3231_v31, 16 }
  0x69   : > { %v1145_v45 = vrot.slane %v1144_v22, 4  ;;  %v1289_v15 = vsel %vm3074_vm7, %v2145_v53, %v1288_v26  ;;  %v1290_v62 = vrot.slane %v1288_v26, 4  ;;  %v1553_v63 = vshll.u32 %v3231_v31, 16 }
  0x6a   : > { %v1155_v49 = vrot.slane %v1154_v37, 4  ;;  %v1546_v3 = vrot.slane %v1544_v41, 4  ;;  %v1549_v54 = vrot.slane %v1547_v28, 5  ;;  %v1559_v5 = vrot.slane %v1557_v48, 4 }
  0x6b   : > { %2303 = vmatmul.mubr.msk.bf16.gmra.mxu1 %vm488_vm3, %v3175_v50  ;;  %v1150_v8 = vsel %vm2926_vm4, %v1145_v45, %v1149_v20  ;;  %v1292_v13 = vsel %vm3074_vm7, %v1290_v62, %v1291_v27  ;;  %v1563_v59 = vshll.u32 %v265_v29, 16  ;;  %v1555_v6 = vrot.slane %v1553_v63, 5 }
  0x6c   : > { %2306 = vmatprep.mubr.msk.bf16.mxu1 %vm488_vm3, %v3181_v17  ;;  %v1160_v60 = vsel %vm2926_vm4, %v1155_v49, %v1159_v39  ;;  %v3252_v61 = vcombine.low %v1289_v15, %v1292_v13  ;;  %v1550_v34 = vor.u32 %v1549_v54, %v1546_v3  ;;  %v2176_v12 = vrot.slane %v3224_v25, 9 }
  0x6d   : > { %v3254_v10 = vcombine.low %v1150_v8, %v1160_v60  ;;  %v1694_v20 = vrot.slane %v3231_v31, 5  ;;  %v1560_v22 = vor.u32 %v1559_v5, %v1555_v6  ;;  %v1565_v53 = vrot.slane %v1563_v59, 5 }
  0x6e   : > { %v1551_v14 = vrot.slane %v1550_v34, 4  ;;  %v1697_v26 = vrot.slane %v265_v29, 5  ;;  %v2089_v27 = vcombine.low %v2945_v52, %v2949_v57  ;;  %v2090_v37 = vcombine.low %v2986_v32, %v2999_v44 }
  0x6f   : > { %2325 = vmatmul.mubr.msk.bf16.gmra.mxu0 %vm488_vm3, %v3214_v1  ;;  %v3266_v39 = vsel %vm3074_vm7, %v2176_v12, %v1694_v20  ;;  %v1696_v41 = vrot.slane %v1694_v20, 4  ;;  %v841_v52 = vsel %vm3074_vm7, %v2107_v4, %v840_v56  ;;  %v844_v57 = vsel %vm3074_vm7, %v842_v18, %v843_v58 }
  0x70   : > { %2328 = vmatprep.mubr.msk.bf16.mxu0 %vm488_vm3, %v3219_v16  ;;  %v1556_v32 = vsel %vm2926_vm4, %v1551_v14, %v1555_v6  ;;  %v1561_v44 = vrot.slane %v1560_v22, 4  ;;  %v2116_v56 = vcombine.low %v841_v52, %v844_v57  ;;  %v2091_v58 = vcombine.low %v3042_v35, %v3049_v42  ;;  %v2166_v35 = vld [vmem:[%s3830_s1 + $0xe] sm:$0x3] }
  0x71   : > { %v3282_v28 = vsel %vm3074_vm7, %v1696_v41, %v1697_v26  ;;  %v1428_v30 = vsel %vm513_vm0, %v3151_v38, 0  ;;  %v2126_v42 = vcombine.low %v3171_v47, %v3188_v19  ;;  %v1576_v38 = vsel %vm513_vm0, %v2166_v35, 0 }
  0x72   : > { %v1566_v29 = vsel %vm2926_vm4, %v1561_v44, %v1565_v53  ;;  %v2178_v45 = vcombine.low %v3266_v39, %v3282_v28 }
  0x73   : > { %2307 = vmatmul.mubr.msk.bf16.gmra.mxu1 %vm488_vm3, %v2089_v27  ;;  %v3289_v4 = vcombine.low %v1556_v32, %v1566_v29 }
  0x74   : > { %2310 = vmatprep.mubr.msk.bf16.mxu1 %vm488_vm3, %v2090_v37 }
  0x77   : > { %2329 = vmatmul.mubr.msk.bf16.gmra.mxu0 %vm488_vm3, %v2116_v56 }
  0x78   : > { %2352 = vmatprep.mubr.msk.bf16.mxu0 %vm488_vm3, %v2988_v33  ;;  %v1302_v33 = vsel %vm513_vm0, %v3199_v11, 0 }
  0x7b   : > { %2311 = vmatmul.mubr.msk.bf16.gmra.mxu1 %vm488_vm3, %v2091_v58 }
  0x7c   : > { %2334 = vmatprep.mubr.msk.bf16.mxu1 %vm488_vm3, %v3141_v36  ;;  %v1708_v36 = vsel %vm513_vm0, %v2177_v24, 0 }
  0x7f   : > { %2353 = vmatmul.mubr.msk.bf16.vlgmr.msra.gmra.mxu0 %vm488_vm3, %v3051_v43 }
  0x80   : > { %2387 = vmatpush3.bf16.msra.mxu0 %v1428_v30  ;;  %2356 = vmatprep.mubr.msk.bf16.mxu0 %vm488_vm3, %v3088_v46 }
  0x81   : > { %2451 = vmatprep.subr.msk.bf16.mxu0 %vm513_vm0, %v2177_v24 }
  0x83   : > { %2335 = vmatmul.mubr.msk.bf16.vlgmr.msra.gmra.mxu1 %vm488_vm3, %v3164_v40 }
  0x84   : > { %2369 = vmatpush3.bf16.msra.mxu1 %v1302_v33  ;;  %2338 = vmatprep.mubr.msk.bf16.mxu1 %vm488_vm3, %v3175_v50 }
  0x85   : > { %2450 = vmatprep.subr.msk.bf16.mxu1 %vm513_vm0, %v2166_v35 }
  0x87   : > { %2357 = vmatmul.mubr.msk.bf16.gmra.mxu0 %vm488_vm3, %v2965_v7 }
  0x88   : > { %2360 = vmatprep.mubr.msk.bf16.mxu0 %vm488_vm3, %v3023_v9 }
  0x8b   : > { %2339 = vmatmul.mubr.msk.bf16.gmra.mxu1 %vm488_vm3, %v3181_v17 }
  0x8c   : > { %2342 = vmatprep.mubr.msk.bf16.mxu1 %vm488_vm3, %v2089_v27 }
  0x8f   : > { %2361 = vmatmul.mubr.msk.bf16.gmra.mxu0 %vm488_vm3, %v3069_v2 }
  0x90   : > { %2364 = vmatprep.mubr.msk.bf16.mxu0 %vm488_vm3, %v3115_v0 }
  0x93   : > { %2343 = vmatmul.mubr.msk.bf16.gmra.mxu1 %vm488_vm3, %v2090_v37 }
  0x94   : > { %2346 = vmatprep.mubr.msk.bf16.mxu1 %vm488_vm3, %v2091_v58 }
  0x97   : > { %2365 = vmatmul.mubr.msk.bf16.gmra.mxu0 %vm488_vm3, %v3254_v10 }
  0x98   : > { %2388 = vmatprep.mubr.msk.bf16.mxu0 %vm488_vm3, %v3164_v40 }
  0x9b   : > { %2347 = vmatmul.mubr.msk.bf16.gmra.mxu1 %vm488_vm3, %v2126_v42 }
  0x9c   : > { %2370 = vmatprep.mubr.msk.bf16.mxu1 %vm488_vm3, %v3126_v23  ;;  %v2157_v23 = vcombine.low %v3224_v25, %v3231_v31 }
  0x9f   : > { %2389 = vmatmul.mubr.msk.bf16.vlgmr.msra.gmra.mxu0 %vm488_vm3, %v3175_v50 }
  0xa0   : > { %2423 = vmatpush3.bf16.msra.mxu0 %v1708_v36  ;;  %2392 = vmatprep.mubr.msk.bf16.mxu0 %vm488_vm3, %v3181_v17 }
  0xa3   : > { %2371 = vmatmul.mubr.msk.bf16.vlgmr.msra.gmra.mxu1 %vm488_vm3, %v3133_v21 }
  0xa4   : > { %2405 = vmatpush3.bf16.msra.mxu1 %v1576_v38  ;;  %2374 = vmatprep.mubr.msk.bf16.mxu1 %vm488_vm3, %v3177_v51 }
  0xa7   : > { %2393 = vmatmul.mubr.msk.bf16.gmra.mxu0 %vm488_vm3, %v2089_v27 }
  0xa8   : > { %2396 = vmatprep.mubr.msk.bf16.mxu0 %vm488_vm3, %v2090_v37 }
  0xab   : > { %2375 = vmatmul.mubr.msk.bf16.gmra.mxu1 %vm488_vm3, %v3191_v55 }
  0xac   : > { %2378 = vmatprep.mubr.msk.bf16.mxu1 %vm488_vm3, %v3214_v1 }
  0xaf   : > { %2397 = vmatmul.mubr.msk.bf16.gmra.mxu0 %vm488_vm3, %v2091_v58 }
  0xb0   : > { %2400 = vmatprep.mubr.msk.bf16.mxu0 %vm488_vm3, %v2126_v42 }
  0xb3   : > { %2379 = vmatmul.mubr.msk.bf16.gmra.mxu1 %vm488_vm3, %v3219_v16 }
  0xb4   : > { %2382 = vmatprep.mubr.msk.bf16.mxu1 %vm488_vm3, %v2116_v56 }
  0xb7   : > { %2401 = vmatmul.mubr.msk.bf16.gmra.mxu0 %vm488_vm3, %v2157_v23 }
  0xb8   : > { %2424 = vmatprep.mubr.msk.bf16.mxu0 %vm488_vm3, %v3133_v21 }
  0xbb   : > { %2383 = vmatmul.mubr.msk.bf16.gmra.mxu1 %vm488_vm3, %v3252_v61 }
  0xbc   : > { %2406 = vmatprep.mubr.msk.bf16.mxu1 %vm488_vm3, %v3051_v43 }
  0xbf   : > { %2425 = vmatmul.mubr.msk.bf16.vlgmr.msra.gmra.mxu0 %vm488_vm3, %v3177_v51 }
  0xc0   : > { %2428 = vmatprep.mubr.msk.bf16.mxu0 %vm488_vm3, %v3191_v55 }
  0xc3   : > { %2407 = vmatmul.mubr.msk.bf16.vlgmr.msra.gmra.mxu1 %vm488_vm3, %v3088_v46 }
  0xc4   : > { %2410 = vmatprep.mubr.msk.bf16.mxu1 %vm488_vm3, %v2965_v7 }
  0xc7   : > { %2429 = vmatmul.mubr.msk.bf16.gmra.mxu0 %vm488_vm3, %v3214_v1 }
  0xc8   : > { %2432 = vmatprep.mubr.msk.bf16.mxu0 %vm488_vm3, %v3219_v16 }
  0xcb   : > { %2411 = vmatmul.mubr.msk.bf16.gmra.mxu1 %vm488_vm3, %v3023_v9 }
  0xcc   : > { %2414 = vmatprep.mubr.msk.bf16.mxu1 %vm488_vm3, %v3069_v2 }
  0xcf   : > { %2433 = vmatmul.mubr.msk.bf16.gmra.mxu0 %vm488_vm3, %v2116_v56 }
  0xd0   : > { %2436 = vmatprep.mubr.msk.bf16.mxu0 %vm488_vm3, %v3252_v61 }
  0xd3   : > { %2415 = vmatmul.mubr.msk.bf16.gmra.mxu1 %vm488_vm3, %v3115_v0 }
  0xd4   : > { %2418 = vmatprep.mubr.msk.bf16.mxu1 %vm488_vm3, %v3254_v10 }
  0xd7   : > { %2437 = vmatmul.mubr.msk.bf16.gmra.mxu0 %vm488_vm3, %v2178_v45 }
  0xdb   : > { %2419 = vmatmul.mubr.msk.bf16.gmra.mxu1 %vm488_vm3, %v3289_v4 }
 0x106   : > { %v2282_v7 = vpop.f32.mrf.mxu0 }
 0x108   : > { %v551_v43 = vpop.f32.mrf.mxu0 }
 0x10a   : > { %v2283_v46 = vpop.f32.mrf.mxu0 }
 0x10b   : > { %v2290_v9 = vpop.f32.mrf.mxu1 }
 0x10c   : > { %v554_v40 = vpop.f32.mrf.mxu0 }
 0x10d   : > { %v583_v2 = vpop.f32.mrf.mxu1 }
 0x10f   : > { %v2291_v21 = vpop.f32.mrf.mxu1 }
 0x111   : > { %v586_v47 = vpop.f32.mrf.mxu1 }
 0x117   : > { %v2286_v0 = vpop.f32.mrf.mxu0 }
 0x119   : > { %v567_v50 = vpop.f32.mrf.mxu0 }
 0x11b   : > { %v2294_v51 = vpop.f32.mrf.mxu1  ;;  %v2287_v17 = vpop.f32.mrf.mxu0 }
 0x11d   : > { %v599_v19 = vpop.f32.mrf.mxu1  ;;  %v570_v55 = vpop.f32.mrf.mxu0 }
 0x11f   : > { %v2295_v11 = vpop.f32.mrf.mxu1  ;;  %v2318_v1 = vpop.f32.mrf.mxu0 }
 0x121   : > { %v3401_v16 = vpop.f32.mrf.mxu1  ;;  %v932_v18 = vpop.f32.mrf.mxu0 }
 0x123   : > { %v2300_v25 = vpop.f32.mrf.mxu1  ;;  %v2319_v31 = vpop.f32.mrf.mxu0 }
 0x124   : > { %v724_v15 = vadd.f32 %v2300_v25, %v2282_v7 }
 0x125   : > { %v715_v62 = vpop.f32.mrf.mxu1  ;;  %v935_v48 = vpop.f32.mrf.mxu0 }
 0x126   : > { %v3403_v49 = vadd.f32 %v2318_v1, %v724_v15  ;;  %v716_v3 = vadd.f32 %v715_v62, %v551_v43 }
 0x127   : > { %v2301_v54 = vpop.f32.mrf.mxu1  ;;  %v2322_v63 = vpop.f32.mrf.mxu0 }
 0x128   : > { %v3405_v8 = vadd.f32 %v932_v18, %v716_v3  ;;  %v727_v13 = vadd.f32 %v2301_v54, %v2283_v46 }
 0x129   : > { %v718_v5 = vpop.f32.mrf.mxu1  ;;  %v948_v59 = vpop.f32.mrf.mxu0 }
 0x12a   : > { %v3407_v60 = vadd.f32 %v2319_v31, %v727_v13  ;;  %v719_v61 = vadd.f32 %v718_v5, %v554_v40 }
 0x12b   : > { %v2304_v34 = vpop.f32.mrf.mxu1  ;;  %v2323_v6 = vpop.f32.mrf.mxu0 }
 0x12c   : > { %v3409_v10 = vadd.f32 %v935_v48, %v719_v61  ;;  %v740_v12 = vadd.f32 %v2304_v34, %v2286_v0 }
 0x12d   : > { %v731_v20 = vpop.f32.mrf.mxu1  ;;  %v951_v14 = vpop.f32.mrf.mxu0 }
 0x12e   : > { %v3411_v22 = vadd.f32 %v2322_v63, %v740_v12  ;;  %v732_v53 = vadd.f32 %v731_v20, %v567_v50 }
 0x12f   : > { %v2305_v26 = vpop.f32.mrf.mxu1  ;;  %v2326_v27 = vpop.f32.mrf.mxu0 }
 0x130   : > { %v3413_v37 = vadd.f32 %v948_v59, %v732_v53  ;;  %v743_v39 = vadd.f32 %v2305_v26, %v2287_v17 }
 0x131   : > { %v734_v41 = vpop.f32.mrf.mxu1  ;;  %v964_v52 = vpop.f32.mrf.mxu0 }
 0x132   : > { %v3415_v57 = vadd.f32 %v2323_v6, %v743_v39  ;;  %v735_v32 = vadd.f32 %v734_v41, %v570_v55 }
 0x133   : > { %v2308_v44 = vpop.f32.mrf.mxu1  ;;  %v2327_v28 = vpop.f32.mrf.mxu0 }
 0x134   : > { %v3417_v29 = vadd.f32 %v951_v14, %v735_v32  ;;  %v756_v45 = vadd.f32 %v2308_v44, %v2290_v9 }
 0x135   : > { %v747_v56 = vpop.f32.mrf.mxu1  ;;  %v967_v4 = vpop.f32.mrf.mxu0 }
 0x136   : > { %v3419_v58 = vadd.f32 %v2326_v27, %v756_v45  ;;  %v748_v30 = vadd.f32 %v747_v56, %v583_v2 }
 0x137   : > { %v2309_v24 = vpop.f32.mrf.mxu1  ;;  %v2330_v33 = vpop.f32.mrf.mxu0 }
 0x138   : > { %v3421_v35 = vadd.f32 %v964_v52, %v748_v30  ;;  %v759_v42 = vadd.f32 %v2309_v24, %v2291_v21 }
 0x139   : > { %v750_v36 = vpop.f32.mrf.mxu1  ;;  %v980_v38 = vpop.f32.mrf.mxu0 }
 0x13a   : > { %v3423_v23 = vadd.f32 %v2327_v28, %v759_v42  ;;  %v751_v7 = vadd.f32 %v750_v36, %v586_v47 }
 0x13b   : > { %v2312_v43 = vpop.f32.mrf.mxu1  ;;  %v2331_v46 = vpop.f32.mrf.mxu0 }
 0x13c   : > { %v3425_v40 = vadd.f32 %v967_v4, %v751_v7  ;;  %v772_v9 = vadd.f32 %v2312_v43, %v2294_v51 }
 0x13d   : > { %v763_v0 = vpop.f32.mrf.mxu1  ;;  %v983_v50 = vpop.f32.mrf.mxu0 }
 0x13e   : > { %v3427_v17 = vadd.f32 %v2330_v33, %v772_v9  ;;  %v764_v2 = vadd.f32 %v763_v0, %v599_v19 }
 0x13f   : > { %v2313_v55 = vpop.f32.mrf.mxu1  ;;  %v3429_v1 = vpop.f32.mrf.mxu0 }
 0x140   : > { %v3431_v18 = vadd.f32 %v980_v38, %v764_v2  ;;  %v775_v21 = vadd.f32 %v2313_v55, %v2295_v11 }
 0x141   : > { %v766_v25 = vpop.f32.mrf.mxu1  ;;  %v3433_v31 = vpop.f32.mrf.mxu0 }
 0x142   : > { %3836 = vst [vmem:[#allocation14_spill] sm:$0xff] %v3431_v18  ;;  %v3435_v47 = vadd.f32 %v2331_v46, %v775_v21  ;;  %v767_v15 = vadd.f32 %v766_v25, %v3401_v16 }
 0x143   : > { %v2336_v62 = vpop.f32.mrf.mxu1  ;;  %v3438_v51 = vpop.f32.mrf.mxu0 }
 0x144   : > { %3837 = vst [vmem:[#allocation15_spill] sm:$0xff] %v3435_v47  ;;  %v3440_v48 = vadd.f32 %v983_v50, %v767_v15 }
 0x145   : > { %v1058_v3 = vpop.f32.mrf.mxu1  ;;  %v3442_v19 = vpop.f32.mrf.mxu0 }
 0x146   : > { %3838 = vst [vmem:[#allocation16_spill] sm:$0xff] %v3440_v48 }
 0x147   : > { %v2337_v54 = vpop.f32.mrf.mxu1  ;;  %v3444_v63 = vpop.f32.mrf.mxu0 }
 0x149   : > { %v1061_v13 = vpop.f32.mrf.mxu1  ;;  %v3446_v11 = vpop.f32.mrf.mxu0 }
 0x14b   : > { %v2340_v5 = vpop.f32.mrf.mxu1  ;;  %v3448_v59 = vpop.f32.mrf.mxu0 }
 0x14d   : > { %v1074_v61 = vpop.f32.mrf.mxu1  ;;  %v3450_v34 = vpop.f32.mrf.mxu0 }
 0x14f   : > { %v3452_v16 = vpop.f32.mrf.mxu1  ;;  %v3454_v6 = vpop.f32.mrf.mxu0 }
 0x151   : > { %v3456_v12 = vpop.f32.mrf.mxu1  ;;  %v3458_v20 = vpop.f32.mrf.mxu0 }
 0x153   : > { %v3460_v14 = vpop.f32.mrf.mxu1  ;;  %v3462_v53 = vpop.f32.mrf.mxu0 }
 0x155   : > { %v3464_v26 = vpop.f32.mrf.mxu1  ;;  %v3466_v27 = vpop.f32.mrf.mxu0 }
 0x156   : > { %3839 = vst [vmem:[#allocation17_spill] sm:$0xff] %v3466_v27 }
 0x157   : > { %v3468_v39 = vpop.f32.mrf.mxu1  ;;  %v3470_v41 = vpop.f32.mrf.mxu0 }
 0x158   : > { %3840 = vst [vmem:[#allocation18_spill] sm:$0xff] %v3470_v41 }
 0x159   : > { %v3472_v52 = vpop.f32.mrf.mxu1  ;;  %v3474_v32 = vpop.f32.mrf.mxu0 }
 0x15a   : > { %3841 = vst [vmem:[#allocation19_spill] sm:$0xff] %v3474_v32 }
 0x15b   : > { %v3476_v44 = vpop.f32.mrf.mxu1  ;;  %v3478_v28 = vpop.f32.mrf.mxu0 }
 0x15c   : > { %3842 = vst [vmem:[#allocation20_spill] sm:$0xff] %v3478_v28 }
 0x15d   : > { %v3480_v45 = vpop.f32.mrf.mxu1  ;;  %v3482_v56 = vpop.f32.mrf.mxu0 }
 0x15e   : > { %3843 = vst [vmem:[#allocation21_spill] sm:$0xff] %v3480_v45  ;;  %3844 = vst [vmem:[#allocation22_spill] sm:$0xff] %v3482_v56  ;;  %v1123_v45 = vadd.f32 %v2336_v62, %v3403_v49  ;;  %v1122_v62 = vadd.f32 %v1061_v13, %v3409_v10 }
 0x15f   : > { %v3484_v4 = vpop.f32.mrf.mxu1  ;;  %v2390_v30 = vpop.f32.mrf.mxu0 }
 0x160   : > { %3845 = vst [vmem:[#allocation23_spill] sm:$0xff] %v3484_v4 }
 0x161   : > { %v3486_v24 = vpop.f32.mrf.mxu1  ;;  %v1464_v33 = vpop.f32.mrf.mxu0 }
 0x162   : > { %3846 = vst [vmem:[#allocation24_spill] sm:$0xff] %v3486_v24 }
 0x163   : > { %v2372_v42 = vpop.f32.mrf.mxu1  ;;  %v2391_v36 = vpop.f32.mrf.mxu0 }
 0x165   : > { %v1338_v38 = vpop.f32.mrf.mxu1  ;;  %v3488_v7 = vpop.f32.mrf.mxu0 }
 0x167   : > { %v2373_v43 = vpop.f32.mrf.mxu1  ;;  %v3490_v46 = vpop.f32.mrf.mxu0 }
 0x169   : > { %v1341_v9 = vpop.f32.mrf.mxu1  ;;  %v3492_v0 = vpop.f32.mrf.mxu0 }
 0x16b   : > { %v2376_v50 = vpop.f32.mrf.mxu1  ;;  %v3494_v2 = vpop.f32.mrf.mxu0 }
 0x16d   : > { %v1354_v55 = vpop.f32.mrf.mxu1  ;;  %v3496_v21 = vpop.f32.mrf.mxu0 }
 0x16e   : > { %3847 = vst [vmem:[#allocation25_spill] sm:$0xff] %v3496_v21 }
 0x16f   : > { %v3498_v25 = vpop.f32.mrf.mxu1  ;;  %v3500_v15 = vpop.f32.mrf.mxu0 }
 0x170   : > { %3848 = vst [vmem:[#allocation26_spill] sm:$0xff] %v3500_v15 }
 0x171   : > { %v3502_v56 = vpop.f32.mrf.mxu1  ;;  %v3504_v28 = vpop.f32.mrf.mxu0 }
 0x172   : > { %3849 = vst [vmem:[#allocation27_spill] sm:$0xff] %v3504_v28  ;;  %v1121_v28 = vadd.f32 %v1058_v3, %v3405_v8  ;;  %v1127_v8 = vadd.f32 %v2340_v5, %v3411_v22  ;;  %v1128_v22 = vadd.f32 %v3452_v16, %v3415_v57 }
 0x173   : > { %v3506_v24 = vpop.f32.mrf.mxu1  ;;  %v3508_v48 = vpop.f32.mrf.mxu0 }
 0x174   : > { %3850 = vst [vmem:[#allocation28_spill] sm:$0xff] %v3508_v48  ;;  %v1271_v48 = vadd.f32 %v3429_v1, %v1123_v45  ;;  %v1269_v49 = vadd.f32 %v3433_v31, %v1121_v28  ;;  %v1275_v10 = vadd.f32 %v3444_v63, %v1127_v8 }
 0x175   : > { %v3510_v32 = vpop.f32.mrf.mxu1  ;;  %v3512_v4 = vpop.f32.mrf.mxu0 }
 0x176   : > { %3851 = vst [vmem:[#allocation29_spill] sm:$0xff] %v3510_v32  ;;  %3852 = vst [vmem:[#allocation30_spill] sm:$0xff] %v3512_v4  ;;  %v1124_v4 = vadd.f32 %v2337_v54, %v3407_v60  ;;  %v1401_v1 = vadd.f32 %v1338_v38, %v1269_v49  ;;  %v1125_v60 = vadd.f32 %v1074_v61, %v3413_v37 }
 0x177   : > { %v3514_v47 = vpop.f32.mrf.mxu1  ;;  %v3516_v41 = vpop.f32.mrf.mxu0  ;;  %v1126_v61 = vadd.f32 %v3456_v12, %v3417_v29 }
 0x178   : > { %3853 = vst [vmem:[#allocation31_spill] sm:$0xff] %v3514_v47  ;;  %3854 = vst [vmem:[#allocation32_spill] sm:$0xff] %v3516_v41  ;;  %v1273_v37 = vadd.f32 %v3446_v11, %v1125_v60  ;;  %v1131_v11 = vadd.f32 %v3460_v14, %v3419_v58 }
 0x179   : > { %v3519_v18 = vpop.f32.mrf.mxu1  ;;  %v3521_v15 = vpop.f32.mrf.mxu0 }
 0x17a   : > { %3855 = vst [vmem:[#allocation33_spill] sm:$0xff] %v3521_v15  ;;  %v1403_v15 = vadd.f32 %v2372_v42, %v1271_v48  ;;  %v1405_v38 = vadd.f32 %v1354_v55, %v1273_v37  ;;  %v1279_v8 = vadd.f32 %v3454_v6, %v1131_v11 }
 0x17b   : > { %v3524_v27 = vpop.f32.mrf.mxu1  ;;  %v3526_v21 = vpop.f32.mrf.mxu0 }
 0x17c   : > { %3856 = vst [vmem:[#allocation34_spill] sm:$0xff] %v3526_v21  ;;  %v1272_v21 = vadd.f32 %v3438_v51, %v1124_v4  ;;  %v1529_v31 = vadd.f32 %v2390_v30, %v1403_v15  ;;  %v1527_v51 = vadd.f32 %v1464_v33, %v1401_v1  ;;  %v3554_v30 = vld [vmem:[%s3858_s2] ss:$0 sm:$0xff] }
 0x17d   : > { %v3530_v32 = vpop.f32.mrf.mxu1  ;;  %v3532_v47 = vpop.f32.mrf.mxu0 }
 0x17e   : > { %3857 = vst [vmem:[#allocation35_spill] sm:$0xff] %v3532_v47  ;;  %v1270_v47 = vadd.f32 %v3442_v19, %v1122_v62  ;;  %v1404_v28 = vadd.f32 %v2373_v43, %v1272_v21  ;;  %v1407_v19 = vadd.f32 %v2376_v50, %v1275_v10 }
 0x17f   : > { %v3537_v3 = vpop.f32.mrf.mxu1  ;;  %v2426_v41 = vpop.f32.mrf.mxu0 }
 0x180   : > { %v1402_v5 = vadd.f32 %v1341_v9, %v1270_v47  ;;  %v1530_v57 = vadd.f32 %v2391_v36, %v1404_v28  ;;  %v1276_v47 = vadd.f32 %v3448_v59, %v1128_v22  ;;  %v1274_v36 = vadd.f32 %v3450_v34, %v1126_v61 }
 0x181   : > { %v3541_v54 = vpop.f32.mrf.mxu1  ;;  %v1744_v45 = vpop.f32.mrf.mxu0  ;;  %v1533_v59 = vadd.f32 %v3490_v46, %v1407_v19  ;;  %v1132_v34 = vadd.f32 %v3468_v39, %v3423_v23 }
 0x182   : > { %v1528_v43 = vadd.f32 %v3488_v7, %v1402_v5  ;;  %v1408_v15 = vadd.f32 %v3498_v25, %v1276_v47  ;;  %v3865_v47 = vld [vmem:[#allocation31_spill] sm:$0xff] }
 0x183   : > { %v2408_v48 = vpop.f32.mrf.mxu1  ;;  %v2427_v13 = vpop.f32.mrf.mxu0 }
 0x184   : > { %v1677_v4 = vadd.f32 %v2408_v48, %v1529_v31 }
 0x185   : > { %v1612_v63 = vpop.f32.mrf.mxu1  ;;  %v1747_v42 = vpop.f32.mrf.mxu0 }
 0x186   : > { %v1809_v16 = vadd.f32 %v2426_v41, %v1677_v4  ;;  %v1675_v33 = vadd.f32 %v1612_v63, %v1527_v51  ;;  %v1129_v41 = vadd.f32 %v3464_v26, %v3421_v35  ;;  %v1531_v35 = vadd.f32 %v3492_v0, %v1405_v38  ;;  %v3861_v63 = vld [vmem:[#allocation17_spill] sm:$0xff] }
 0x187   : > { %v2409_v29 = vpop.f32.mrf.mxu1  ;;  %v2430_v12 = vpop.f32.mrf.mxu0  ;;  %v1406_v26 = vadd.f32 %v3502_v56, %v1274_v36  ;;  %v1130_v56 = vadd.f32 %v3472_v52, %v3425_v40  ;;  %v1534_v0 = vadd.f32 %v3494_v2, %v1408_v15  ;;  %v1135_v40 = vadd.f32 %v3476_v44, %v3427_v17  ;;  %v3859_v52 = vld [vmem:[#allocation25_spill] sm:$0xff]  ;;  %v3862_v17 = vld [vmem:[#allocation14_spill] sm:$0xff]  ;;  %v3868_v15 = vld [vmem:[#allocation23_spill] sm:$0xff] }
 0x188   : > { %v3563_v9 = vadd.f32 %v3554_v30, %v1809_v16  ;;  %v1807_v50 = vadd.f32 %v1744_v45, %v1675_v33  ;;  %v1678_v21 = vadd.f32 %v2409_v29, %v1530_v57  ;;  %v1277_v39 = vadd.f32 %v3458_v20, %v1129_v41  ;;  %v3860_v2 = vld [vmem:[#allocation29_spill] sm:$0xff]  ;;  %v3864_v16 = vld [vmem:[#allocation26_spill] sm:$0xff] }
 0x189   : > { %v1615_v58 = vpop.f32.mrf.mxu1  ;;  %v1760_v14 = vpop.f32.mrf.mxu0  ;;  %v1411_v45 = vadd.f32 %v3506_v24, %v1279_v8  ;;  %v1532_v24 = vadd.f32 %v3859_v52, %v1406_v26  ;;  %v3863_v44 = vld [vmem:[#allocation21_spill] sm:$0xff]  ;;  %v3866_v36 = vld [vmem:[#allocation18_spill] sm:$0xff] }
 0x18a   : > { %v1848_v55 = vmax.f32 %v3563_v9, 0.0  ;;  %v3572_v7 = vadd.f32 %v3554_v30, %v1807_v50  ;;  %v1810_v49 = vadd.f32 %v2427_v13, %v1678_v21  ;;  %v1676_v62 = vadd.f32 %v1615_v58, %v1528_v43 }
 0x18b   : > { %v2412_v46 = vpop.f32.mrf.mxu1  ;;  %v2431_v25 = vpop.f32.mrf.mxu0  ;;  %v1280_v13 = vadd.f32 %v3462_v53, %v1132_v34  ;;  %v1409_v51 = vadd.f32 %v3860_v2, %v1277_v39  ;;  %v1133_v57 = vadd.f32 %v3863_v44, %v3862_v17  ;;  %v1537_v33 = vadd.f32 %v3864_v16, %v1411_v45  ;;  %v3871_v39 = vld [vmem:[#allocation16_spill] sm:$0xff]  ;;  %v3876_v44 = vld [vmem:[#allocation22_spill] sm:$0xff] }
 0x18c   : > { %1864 = vst [vmem:[%s3579_s29 + $0x10] sm:$0xff] %v1848_v55  ;;  %v1846_v1 = vmax.f32 %v3572_v7, 0.0  ;;  %v3586_v6 = vadd.f32 %v3554_v30, %v1810_v49  ;;  %v1808_v60 = vadd.f32 %v1747_v42, %v1676_v62  ;;  %v1681_v23 = vadd.f32 %v2412_v46, %v1533_v59  ;;  %v3867_v59 = vld [vmem:[#allocation15_spill] sm:$0xff]  ;;  %v3873_v45 = vld [vmem:[#allocation28_spill] sm:$0xff] }
 0x18d   : > { %v1628_v31 = vpop.f32.mrf.mxu1  ;;  %v1763_v28 = vpop.f32.mrf.mxu0  ;;  %v1278_v42 = vadd.f32 %v3861_v63, %v1130_v56  ;;  %v1412_v11 = vadd.f32 %v3865_v47, %v1280_v13  ;;  %v1283_v41 = vadd.f32 %v3866_v36, %v1135_v40  ;;  %v1136_v58 = vadd.f32 %v3868_v15, %v3867_v59  ;;  %v3872_v56 = vld [vmem:[#allocation24_spill] sm:$0xff]  ;;  %v3878_v36 = vld [vmem:[#allocation33_spill] sm:$0xff] }
 0x18e   : > { %1862 = vst [vmem:[%s3579_s29] sm:$0xff] %v1846_v1  ;;  %v1849_v10 = vmax.f32 %v3586_v6, 0.0  ;;  %v3598_v22 = vadd.f32 %v3554_v30, %v1808_v60  ;;  %v1813_v48 = vadd.f32 %v2430_v12, %v1681_v23  ;;  %v1679_v20 = vadd.f32 %v1628_v31, %v1531_v35  ;;  %v3870_v60 = vld [vmem:[#allocation19_spill] sm:$0xff]  ;;  %v3877_v16 = vld [vmem:[#allocation32_spill] sm:$0xff] }
 0x18f   : > { %v2413_v5 = vpop.f32.mrf.mxu1  ;;  %v2434_v4 = vpop.f32.mrf.mxu0  ;;  %v1410_v62 = vadd.f32 %v3519_v18, %v1278_v42  ;;  %v1281_v23 = vadd.f32 %v3870_v60, %v1133_v57  ;;  %v1538_v18 = vadd.f32 %v3873_v45, %v1412_v11  ;;  %v1415_v31 = vadd.f32 %v3524_v27, %v1283_v41 }
 0x190   : > { %1865 = vst [vmem:[%s3579_s29 + $0x18] sm:$0xff] %v1849_v10  ;;  %v1847_v37 = vmax.f32 %v3598_v22, 0.0  ;;  %v3610_v61 = vadd.f32 %v3554_v30, %v1813_v48  ;;  %v1811_v19 = vadd.f32 %v1760_v14, %v1679_v20  ;;  %v1682_v53 = vadd.f32 %v2413_v5, %v1534_v0  ;;  %v3869_v14 = vld [vmem:[#allocation27_spill] sm:$0xff] }
 0x191   : > { %v1631_v38 = vpop.f32.mrf.mxu1  ;;  %v1776_v29 = vpop.f32.mrf.mxu0  ;;  %v1535_v49 = vadd.f32 %v3869_v14, %v1409_v51  ;;  %v1134_v0 = vadd.f32 %v3872_v56, %v3871_v39  ;;  %v3875_v51 = vld [vmem:[#allocation30_spill] sm:$0xff] }
 0x192   : > { %1863 = vst [vmem:[%s3579_s29 + $0x8] sm:$0xff] %v1847_v37  ;;  %v1852_v12 = vmax.f32 %v3610_v61, 0.0  ;;  %v3622_v43 = vadd.f32 %v3554_v30, %v1811_v19  ;;  %v1814_v50 = vadd.f32 %v2431_v25, %v1682_v53  ;;  %v1680_v21 = vadd.f32 %v1631_v38, %v1532_v24  ;;  %v3874_v24 = vld [vmem:[#allocation20_spill] sm:$0xff] }
 0x193   : > { %v2416_v8 = vpop.f32.mrf.mxu1  ;;  %v2435_v34 = vpop.f32.mrf.mxu0  ;;  %v1284_v2 = vadd.f32 %v3874_v24, %v1136_v58  ;;  %v1536_v5 = vadd.f32 %v3875_v51, %v1410_v62  ;;  %v1413_v19 = vadd.f32 %v3530_v32, %v1281_v23  ;;  %v1282_v57 = vadd.f32 %v3876_v44, %v1134_v0  ;;  %v3879_v62 = vld [vmem:[#allocation34_spill] sm:$0xff] }
 0x194   : > { %1868 = vst [vmem:[%s3579_s29 + $0x30] sm:$0xff] %v1852_v12  ;;  %v1850_v35 = vmax.f32 %v3622_v43, 0.0  ;;  %v3634_v26 = vadd.f32 %v3554_v30, %v1814_v50  ;;  %v1812_v46 = vadd.f32 %v1763_v28, %v1680_v21  ;;  %v1685_v25 = vadd.f32 %v2416_v8, %v1537_v33 }
 0x195   : > { %v1644_v48 = vpop.f32.mrf.mxu1  ;;  %v1779_v20 = vpop.f32.mrf.mxu0  ;;  %v1541_v33 = vadd.f32 %v3877_v16, %v1415_v31  ;;  %v1416_v47 = vadd.f32 %v3537_v3, %v1284_v2  ;;  %v1414_v41 = vadd.f32 %v3541_v54, %v1282_v57  ;;  %v3880_v54 = vld [vmem:[#allocation35_spill] sm:$0xff] }
 0x196   : > { %1866 = vst [vmem:[%s3579_s29 + $0x20] sm:$0xff] %v1850_v35  ;;  %v1853_v13 = vmax.f32 %v3634_v26, 0.0  ;;  %v3646_v28 = vadd.f32 %v3554_v30, %v1812_v46  ;;  %v1817_v40 = vadd.f32 %v2434_v4, %v1685_v25  ;;  %v1683_v52 = vadd.f32 %v1644_v48, %v1535_v49 }
 0x197   : > { %v2417_v27 = vpop.f32.mrf.mxu1  ;;  %v2438_v53 = vpop.f32.mrf.mxu0  ;;  %v1542_v8 = vadd.f32 %v3879_v62, %v1416_v47  ;;  %v1540_v39 = vadd.f32 %v3880_v54, %v1414_v41 }
 0x198   : > { %1869 = vst [vmem:[%s3579_s29 + $0x38] sm:$0xff] %v1853_v13  ;;  %v1851_v63 = vmax.f32 %v3646_v28, 0.0  ;;  %v3656_v42 = vadd.f32 %v3554_v30, %v1817_v40  ;;  %v1815_v4 = vadd.f32 %v1776_v29, %v1683_v52  ;;  %v1686_v17 = vadd.f32 %v2417_v27, %v1538_v18 }
 0x199   : > { %v1647_v32 = vpop.f32.mrf.mxu1  ;;  %v1539_v29 = vadd.f32 %v3878_v36, %v1413_v19  ;;  %v1792_v15 = vpop.f32.mrf.mxu0 }
 0x19a   : > { %1867 = vst [vmem:[%s3579_s29 + $0x28] sm:$0xff] %v1851_v63  ;;  %v1856_v11 = vmax.f32 %v3656_v42, 0.0  ;;  %v1838_v38 = vadd.f32 %v3554_v30, %v1815_v4  ;;  %v1818_v50 = vadd.f32 %v2435_v34, %v1686_v17  ;;  %v1684_v21 = vadd.f32 %v1647_v32, %v1536_v5 }
 0x19b   : > { %v2420_v59 = vpop.f32.mrf.mxu1  ;;  %v2439_v0 = vpop.f32.mrf.mxu0 }
 0x19c   : > { %1872 = vst [vmem:[%s3579_s29 + $0x50] sm:$0xff] %v1856_v11  ;;  %v1854_v3 = vmax.f32 %v1838_v38, 0.0  ;;  %v1841_v58 = vadd.f32 %v3554_v30, %v1818_v50  ;;  %v1816_v14 = vadd.f32 %v1779_v20, %v1684_v21  ;;  %v1689_v49 = vadd.f32 %v2420_v59, %v1541_v33 }
 0x19d   : > { %v1660_v46 = vpop.f32.mrf.mxu1  ;;  %v1795_v51 = vpop.f32.mrf.mxu0 }
 0x19e   : > { %1870 = vst [vmem:[%s3579_s29 + $0x40] sm:$0xff] %v1854_v3  ;;  %v1857_v34 = vmax.f32 %v1841_v58, 0.0  ;;  %v1839_v25 = vadd.f32 %v3554_v30, %v1816_v14  ;;  %v1821_v60 = vadd.f32 %v2438_v53, %v1689_v49  ;;  %v1687_v23 = vadd.f32 %v1660_v46, %v1539_v29 }
 0x19f   : > { %v2421_v56 = vpop.f32.mrf.mxu1 }
 0x1a0   : > { %1873 = vst [vmem:[%s3579_s29 + $0x58] sm:$0xff] %v1857_v34  ;;  %v1855_v45 = vmax.f32 %v1839_v25, 0.0  ;;  %v1844_v18 = vadd.f32 %v3554_v30, %v1821_v60  ;;  %v1819_v31 = vadd.f32 %v1792_v15, %v1687_v23  ;;  %v1690_v48 = vadd.f32 %v2421_v56, %v1542_v8 }
 0x1a1   : > { %v1663_v20 = vpop.f32.mrf.mxu1 }
 0x1a2   : > { %1871 = vst [vmem:[%s3579_s29 + $0x48] sm:$0xff] %v1855_v45  ;;  %v1860_v40 = vmax.f32 %v1844_v18, 0.0  ;;  %v1842_v52 = vadd.f32 %v3554_v30, %v1819_v31  ;;  %v1822_v24 = vadd.f32 %v2439_v0, %v1690_v48  ;;  %v1688_v2 = vadd.f32 %v1663_v20, %v1540_v39 }
 0x1a4   : > { %1876 = vst [vmem:[%s3579_s29 + $0x70] sm:$0xff] %v1860_v40  ;;  %v1858_v5 = vmax.f32 %v1842_v52, 0.0  ;;  %v1845_v19 = vadd.f32 %v3554_v30, %v1822_v24  ;;  %v1820_v27 = vadd.f32 %v1795_v51, %v1688_v2 }
 0x1a6   : > { %1874 = vst [vmem:[%s3579_s29 + $0x60] sm:$0xff] %v1858_v5  ;;  %v1861_v53 = vmax.f32 %v1845_v19, 0.0  ;;  %v1843_v42 = vadd.f32 %v3554_v30, %v1820_v27  ;;  %1881 = sbr.rel (%p2188_p6) target bundleno = 429 (0x1ad), region = 36 }
 0x1a8   : > { %1877 = vst [vmem:[%s3579_s29 + $0x78] sm:$0xff] %v1861_v53  ;;  %v1859_v4 = vmax.f32 %v1843_v42, 0.0 }
 0x1aa   : > { %1875 = vst [vmem:[%s3579_s29 + $0x68] sm:$0xff] %v1859_v4 }
 0x1ab   : > { %v2715_v17 = vmov 0.0  }
 0x1ac   : > { %1882 = vst [vmem:[%s3686_s30] sm:$0x1] %v2715_v17 }
 0x1ad PF: > { %v1884_v44 = vadd.f32 %v1847_v37, %v1846_v1  ;;  %p2189_p8 = scmp.ne.s32.totalorder %s2697_s21, 1 }
 0x1af   : > { %v1885_v30 = vadd.f32 %v1884_v44, %v1848_v55 }
 0x1b1   : > { %v1886_v57 = vadd.f32 %v1885_v30, %v1849_v10 }
 0x1b3   : > { %v1887_v16 = vadd.f32 %v1886_v57, %v1850_v35  ;;  %v1883_v61 = vld [vmem:[%s3686_s30] sm:$0x1] }
 0x1b5   : > { %v1888_v33 = vadd.f32 %v1887_v16, %v1851_v63 }
 0x1b7   : > { %v1889_v47 = vadd.f32 %v1888_v33, %v1852_v12 }
 0x1b9   : > { %v1890_v7 = vadd.f32 %v1889_v47, %v1853_v13 }
 0x1bb   : > { %v1891_v1 = vadd.f32 %v1890_v7, %v1854_v3 }
 0x1bd   : > { %v1892_v9 = vadd.f32 %v1891_v1, %v1855_v45 }
 0x1bf   : > { %v1893_v55 = vadd.f32 %v1892_v9, %v1856_v11 }
 0x1c1   : > { %v1894_v22 = vadd.f32 %v1893_v55, %v1857_v34 }
 0x1c3   : > { %v1895_v6 = vadd.f32 %v1894_v22, %v1858_v5 }
 0x1c5   : > { %v1896_v10 = vadd.f32 %v1895_v6, %v1859_v4 }
 0x1c7   : > { %v1897_v37 = vadd.f32 %v1896_v10, %v1860_v40 }
 0x1c9   : > { %v1898_v43 = vadd.f32 %v1897_v37, %v1861_v53 }
 0x1cb   : > { %v1899_v35 = vrot.slane %v1898_v43, 4 }
 0x1cd   : > { %v1900_v32 = vadd.f32 %v1899_v35, %v1898_v43 }
 0x1cf   : > { %v1901_v28 = vrot.slane %v1900_v32, 2 }
 0x1d1   : > { %v1902_v63 = vadd.f32 %v1901_v28, %v1900_v32 }
 0x1d3   : > { %v1903_v38 = vrot.slane %v1902_v63, 1 }
 0x1d5   : > { %v1904_v50 = vadd.f32 %v1903_v38, %v1902_v63  ;;  %1910 = sbr.rel (%p2189_p8) target bundleno = 484 (0x1e4), region = 40 }
 0x1d7   : > { %v1905_v12 = vadd.f32 %v1904_v50, %v1883_v61 }
 0x1d9   : > { %1906 = vst [vmem:[%s3686_s30] sm:$0x1] %v1905_v12 }
 0x1e0   : > { %v1911_v26 = vld [vmem:[%s3686_s30] sm:$0x1] }
 0x1e1   : > { %v1912_v13 = vmul.f32 0.00390625, %v1911_v26 }
 0x1e3   : > { %1913 = vst [vmem:[%s3686_s30] sm:$0x1] %v1912_v13 }
 0x1e4 PF: > { %s2191_s5 = sshll.u32 %s2697_s21, 4  ;;  %s2192_s8 = sshll.u32 %s2701_s22, 5 }
 0x1e5   : > { %s1934_s20 = sshll.u32 %s3579_s29, 4  ;;  %s1931_s9 = sadd.s32 %s2192_s8, %s2191_s5  ;;  %s3714_s20 = int_to_ptr.vmem [resolvable:$true] %s1934_s20 }
 0x1e6   : > { %s2193_s12 = sshll.u32 %s1931_s9, 7  ;;  %s3723_s28 = scalar_lea.sflag [#allocation3], %s216_s11 }
 0x1e7   : > { %s3719_s24 = scalar_lea.hbm %s3808_s3, %s2193_s12  ;;  %s2567_s26 = scalar_lea.vmem %s3714_s20, 2048 }
 0x1e8   : > { %p2568_p9 = scmp.ne.s32.totalorder %s3714_s20, %s2567_s26  ;;  %s2716_s21 = smov [#allocation2]  }
 0x1e9   : > { %s2571_s29 = sshll.u32 %s2716_s21, 4  ;;  %s2572_s29 = int_to_ptr.vmem [resolvable:$false] %s2571_s29 }
 0x1ea   : > { %p2569_p10 = pnand %p2568_p9, %p2818_p3  ;;  %s2573_s5 = scalar_lea.vmem %s2572_s29, 4096 }
 0x1eb   : > { %p2574_p0 = scmp.lt.s32.totalorder %s3714_s20, %s2572_s29  ;;  %p2575_p1 = scmp.lt.s32.totalorder %s2573_s5, %s2567_s26 }
 0x1ec   : > { %p2570_p11 = pneg %p2569_p10 }
 0x1ed   : > { %p2576_p4 = por %p2575_p1, %p2574_p0 }
 0x1ef   : > { %p2577_p2 = pnand %p2576_p4, %p2570_p11 }
 0x1f1   : > { %2580 = shalt.err (!%p2577_p2)
}
 0x1f2   : > { %s2581_s11 = scalar_lea.hbm %s3719_s24, 2048  ;;  %s2585_s12 = scalar_lea.hbm %s3808_s3, 8192 }
 0x1f3   : > { %p2582_p5 = scmp.ne.s32.totalorder %s3719_s24, %s2581_s11  ;;  %p2586_p9 = scmp.lt.s32.totalorder %s3719_s24, %s3808_s3 }
 0x1f4   : > { %p2587_p10 = scmp.lt.s32.totalorder %s2585_s12, %s2581_s11 }
 0x1f5   : > { %p2583_p6 = pnand %p2582_p5, %p2818_p3 }
 0x1f6   : > { %p2588_p11 = por %p2587_p10, %p2586_p9 }
 0x1f7   : > { %p2584_p8 = pneg %p2583_p6 }
 0x1f9   : > { %p2589_p0 = pnand %p2588_p11, %p2584_p8 }
 0x1fb   : > { %2592 = shalt.err (!%p2589_p0)
}
 0x1fc   : > { %s2717_s26 = smov 128   ;;  %s2718_s21 = smov 8  }
 0x1fd   : > { %2454 = dma.vmem_to_hbm [thread:$0]  (%p2818_p3), %s3714_s20, 2048, %s3719_s24, %s3723_s28, %s2717_s26, %s2717_s26, %s2718_s21  }
 0x1fe   : > { %s2194_s29 = sshll.u32 %s2701_s22, 4  ;;  %s1950_s9 = sshll.u32 %s3686_s30, 4  ;;  %s1951_s9 = int_to_ptr.vmem [resolvable:$true] %s1950_s9 }
 0x1ff   : > { %s1948_s11 = scalar_lea.hbm %s3809_s4, %s2194_s29  ;;  %s3882_s12 = sand.u32 1, %s2677_s16  }
 0x200   : > { %s1920_s6 = scalar_lea.sflag [#allocation5], %s3882_s12  ;;  %s2593_s23 = scalar_lea.vmem %s1951_s9, 16 }
 0x201   : > { %p2594_p1 = scmp.ne.s32.totalorder %s1951_s9, %s2593_s23  ;;  %s2719_s0 = smov [#allocation4]  }
 0x202   : > { %s2597_s1 = sshll.u32 %s2719_s0, 4  ;;  %s2598_s1 = int_to_ptr.vmem [resolvable:$false] %s2597_s1 }
 0x203   : > { %p2595_p4 = pnand %p2594_p1, %p2845_p12  ;;  %s2599_s2 = scalar_lea.vmem %s2598_s1, 32 }
 0x204   : > { %p2600_p5 = scmp.lt.s32.totalorder %s1951_s9, %s2598_s1  ;;  %p2601_p3 = scmp.lt.s32.totalorder %s2599_s2, %s2593_s23 }
 0x205   : > { %p2596_p2 = pneg %p2595_p4 }
 0x206   : > { %p2602_p6 = por %p2601_p3, %p2600_p5 }
 0x208   : > { %p2603_p8 = pnand %p2602_p6, %p2596_p2 }
 0x20a   : > { %2606 = shalt.err (!%p2603_p8)
}
 0x20b   : > { %s2607_s22 = scalar_lea.hbm %s1948_s11, 16  ;;  %s2611_s20 = scalar_lea.hbm %s3809_s4, 32 }
 0x20c   : > { %p2608_p9 = scmp.ne.s32.totalorder %s1948_s11, %s2607_s22  ;;  %p2612_p0 = scmp.lt.s32.totalorder %s1948_s11, %s3809_s4 }
 0x20d   : > { %p2613_p1 = scmp.lt.s32.totalorder %s2611_s20, %s2607_s22 }
 0x20e   : > { %p2609_p10 = pnand %p2608_p9, %p2845_p12 }
 0x20f   : > { %p2614_p4 = por %p2613_p1, %p2612_p0 }
 0x210   : > { %p2610_p11 = pneg %p2609_p10 }
 0x212   : > { %p2615_p13 = pnand %p2614_p4, %p2610_p11 }
 0x214   : > { %2618 = shalt.err (!%p2615_p13)
}
 0x215   : > { %2455 = dma.vmem_to_hbm [thread:$0]  (%p2845_p12), %s1951_s9, 16, %s1948_s11, %s1920_s6  }
 0x216 PF: > { %p2465_p2 = scmp.ge.s32.totalorder %s2713_s25, 2  ;;  %s1962_s0 = sand.u32 1, %s2685_s18  }
 0x217   : > { %s1963_s1 = scalar_lea.sflag [#allocation3], %s1962_s0 }
 0x218   : > { %p2459_p5 = pnand %p2465_p2, %p2833_p7 }
 0x21a   : > { %p2460_p3 = pneg %p2459_p5 }
 0x21c   : > { %2664 = dma.done.wait (%p2460_p3), %s1963_s1, 2048  }
 0x21d   : > { %2666 = vsyncadd (%p2460_p3), %s1963_s1, 4294965248  ;;  %s1971_s2 = sand.u32 1, %s2673_s15   ;;  %p3883_p6 = scmp.ne.s32.totalorder %s3829_s27, 0 }
 0x21e   : > { %s1972_s13 = scalar_lea.sflag [#allocation5], %s1971_s2 }
 0x21f   : > { %p2462_p13 = pnand %p2465_p2, %p3883_p6 }
 0x221   : > { %p2463_p8 = pneg %p2462_p13 }
 0x223   : > { %2668 = dma.done.wait (%p2463_p8), %s1972_s13, 16  }
 0x224   : > { %2670 = vsyncadd (%p2463_p8), %s1972_s13, 4294967280  ;;  %s21_s25 = sadd.s32 1, %s2713_s25   ;;  %s3884_s10 = sld [smem:[#allocation8_spill]] }
 0x225   : > { %p18_p12 = scmp.ge.s32.totalorder %s21_s25, 6   ;;  %s3885_s20 = sld [smem:[#allocation13_spill]] }
 0x226   : > { %s3886_s21 = sld [smem:[#allocation9_spill]]  ;;  %s3890_s15 = smov %s2677_s16 }
 0x227   : > { %s3887_s22 = sld [smem:[#allocation10_spill]]  ;;  %s3891_s16 = smov %s2681_s17 }
 0x228   : > { %s3888_s23 = sld [smem:[#allocation11_spill]]  ;;  %s3892_s17 = smov %s2850_s14 }
 0x229   : > { %s3889_s24 = sld [smem:[#allocation12_spill]]  ;;  %s3893_s18 = smov %s2689_s19 }
 0x22a   : > { %s3894_s19 = smov %s3884_s10  ;;  %20 = sbr.rel (!%p18_p12) target bundleno = 13 (0xd), region = 100 }
 0x22f   :  { %1976 = vsyncpa [#allocation3], 1 }
 0x230   :  { %1978 = vsyncpa [#allocation3 + $0x1], 1 }
 0x231   :  { %1979 = vsyncpa [#allocation5], 1 }
 0x232   :  { %1981 = vsyncpa [#allocation5 + $0x1], 1 }

</bundles_post_ra>
